<compile_context>
chip_gen: v7x
topology: tpu7x:2x2x1
jax: 0.10.0
libtpu: 0.0.40
codegen_flags: <defaults>
</compile_context>

<pallas_src>
import functools

import jax
import jax.numpy as jnp
from jax.experimental import pallas as pl
from jax.experimental.pallas import tpu as pltpu

EPS = 1e-12
NEG_INF = -1e30
COMPUTE_DTYPE = jnp.bfloat16          # MXU operand dtype; accumulation is f32


def _round_up(x, m):
    return ((x + m - 1) // m) * m


def _pick_vmem_limit():
    """Scoped-VMEM budget derived from the chip (v5e/v6e: 128 MiB, v7x: 64 MiB)."""
    cap = 64 * 1024 * 1024            # conservative fallback (v7x-sized)
    try:
        cap = int(getattr(pltpu.get_tpu_info(), "vmem_capacity_bytes", cap))
    except Exception:
        pass
    return min(int(cap * 0.85), 112 * 1024 * 1024)


VMEM_LIMIT = _pick_vmem_limit()


# ----------------------------------------------------------------------------
# In-kernel math helpers (operate on jnp values)
# ----------------------------------------------------------------------------

def _layer_norm(x, w, b):
    # x: (R, F) f32; w, b: (1, F)
    mu = jnp.mean(x, axis=-1, keepdims=True)
    var = jnp.mean(jnp.square(x - mu), axis=-1, keepdims=True)
    return (x - mu) * jax.lax.rsqrt(var + EPS) * w + b


def _mm(x, w):
    """Matmul with (bf16) weights on the MXU, f32 accumulation."""
    return jnp.dot(x.astype(w.dtype), w, preferred_element_type=jnp.float32)


# ----------------------------------------------------------------------------
# Pallas kernels
# ----------------------------------------------------------------------------

def sanm_stack_kernel(x_ref, tmask_ref, mem_ref, maskadd_ref, fmask_ref,
                      vd_ref, vh_ref, w1_ref, w2_ref, fsmn_ref,
                      wq_ref, wk_ref, wv_ref, wo_ref,
                      out_ref, x_scr, *, n_heads, left):
    """Fused SANMDecoderLayer stack: grid = (batch_chunk, layer).

    The (Bc*T, D) activation lives in VMEM scratch across the whole layer
    axis; per-layer weights are streamed once per layer (per chunk)."""
    layer = pl.program_id(1)
    n_layers = pl.num_programs(1)

    @pl.when(layer == 0)
    def _():
        x_scr[...] = x_ref[...]

    x = x_scr[...]                                  # (Bc*T, D) f32 running activation
    BT, D = x.shape
    nh = n_heads
    Bc = maskadd_ref.shape[1]
    L = maskadd_ref.shape[3]
    T = BT // Bc
    dk = D // nh

    tmask = tmask_ref[...]                          # (Bc*T, 1)  1 = valid target position
    vd = vd_ref[0]                                  # (10, D): ln1w ln1b ln2w ln2b ln3w ln3b bq bk bv bo
    vh = vh_ref[0]                                  # (3, H):  b1 lnhw lnhb

    # ---- feed-forward (Linear -> ReLU -> LayerNorm(H) -> Linear, no bias) ----
    t1 = _layer_norm(x, vd[0:1], vd[1:2])
    h = jnp.maximum(_mm(t1, w1_ref[0]) + vh[0:1], 0.0)
    h = _layer_norm(h, vh[1:2], vh[2:3])
    ff = _mm(h, w2_ref[0])

    # ---- FSMN "self-attention": depthwise conv along time via XLU rolls ------
    # Zero-fill validity masks (incl. batch-boundary handling on the flattened
    # rows) are hoisted to the wrapper and passed in as fmask_ref.
    t2 = _layer_norm(ff, vd[2:3], vd[3:4])
    xm = t2 * tmask
    taps = fsmn_ref[0]                              # (K, 1, D) depthwise taps
    fmask = fmask_ref[...]                          # (K, Bc*T, 1)
    conv = jnp.zeros_like(xm)
    for k in range(taps.shape[0]):
        off = k - left
        if off == 0:
            shifted = xm
        else:
            shifted = pltpu.roll(xm, shift=(-off) % BT, axis=0) * fmask[k]
        conv = conv + shifted * taps[k]
    x2 = x + (conv + xm) * tmask                    # residual uses the ORIGINAL layer input

    # ---- cross attention (CrossAttention2D + ScaleAttend) --------------------
    x3 = _layer_norm(x2, vd[4:5], vd[5:6])
    q = _mm(x3, wq_ref[0]) + vd[6:7]                # (Bc*T, D)
    mem = mem_ref[...]                              # (Bc*L, D) bf16 encoder memory
    kk = _mm(mem, wk_ref[0]) + vd[7:8]              # (Bc*L, D)
    vv = _mm(mem, wv_ref[0]) + vd[8:9]

    def to_heads(z, rows):
        # (Bc*rows, D) f32 -> (nh*Bc, rows, dk) bf16, head-major (g = h*Bc + b)
        z3 = z.reshape(Bc, rows, D)
        zh = jnp.stack([z3[:, :, hh * dk:(hh + 1) * dk] for hh in range(nh)], axis=0)
        return zh.reshape(nh * Bc, rows, dk).astype(COMPUTE_DTYPE)

    qg = to_heads(q, T)
    kg = to_heads(kk, L)
    vg = to_heads(vv, L)
    mask_g = maskadd_ref[...].reshape(nh * Bc, 1, L)   # hoisted additive pad mask

    s = jnp.einsum('gtd,gld->gtl', qg, kg,
                   preferred_element_type=jnp.float32) * (dk ** -0.5)
    s = s + mask_g
    s = s - jnp.max(s, axis=-1, keepdims=True)
    p = jnp.exp(s)
    p = p * pl.reciprocal(jnp.sum(p, axis=-1, keepdims=True), approx=True)
    # TODO(synk): for very long encoder memories on v7x (64 MiB VMEM), tile the
    # L axis with an online (flash-style) softmax instead of the full (G,T,L) score.
    o = jnp.einsum('gtl,gld->gtd', p.astype(COMPUTE_DTYPE), vg,
                   preferred_element_type=jnp.float32)      # (nh*Bc, T, dk)
    o = o.reshape(nh, Bc * T, dk).astype(COMPUTE_DTYPE)
    # view_out + linear_out folded per head:  sum_h o[h] @ Wo[h*dk:(h+1)*dk, :]
    ca = jnp.sum(jnp.matmul(o, wo_ref[0], preferred_element_type=jnp.float32),
                 axis=0) + vd[9:10]

    x_new = x2 + ca
    x_scr[...] = x_new

    @pl.when(layer == n_layers - 1)
    def _():
        out_ref[...] = x_new.astype(out_ref.dtype)


def ffn3_kernel(x_ref, vd_ref, vh_ref, w1_ref, w2_ref, out_ref, *, apply_after_norm):
    """decoders3 layer (no residual): out = FFN(LN1(x)); optional fused after_norm."""
    x = x_ref[...]                                  # (B*T, D) f32
    vd = vd_ref[...]                                # (2 or 4, D)
    vh = vh_ref[...]                                # (3, H)
    t1 = _layer_norm(x, vd[0:1], vd[1:2])
    h = jnp.maximum(_mm(t1, w1_ref[...]) + vh[0:1], 0.0)
    h = _layer_norm(h, vh[1:2], vh[2:3])
    y = _mm(h, w2_ref[...])
    if apply_after_norm:
        y = _layer_norm(y, vd[2:3], vd[3:4])
    out_ref[...] = y.astype(out_ref.dtype)


def output_kernel(x_ref, w_ref, b_ref, out_ref):
    """Vocab-tiled output projection over all B*T rows at once (grid = vocab tiles)."""
    y = jnp.dot(x_ref[...], w_ref[...], preferred_element_type=jnp.float32) + b_ref[...]
    out_ref[...] = y.astype(out_ref.dtype)


# ----------------------------------------------------------------------------
# Parameter preparation
# ----------------------------------------------------------------------------

SANM_STACK_ORDER = ("vd", "vh", "w1", "w2", "fsmn", "wq", "wk", "wv", "wo")


def prepare_sanm_layer(lp, n_heads):
    """Split wkv -> wk/wv, fold Wo per head, pack LN/bias vectors, bf16 matrices."""
    D = lp["wq"].shape[0]
    dk = D // n_heads
    cd = COMPUTE_DTYPE
    wk = lp["wkv"][:, :D]
    wv = lp["wkv"][:, D:]
    bk = lp["bkv"][:, :D]
    bv = lp["bkv"][:, D:]
    vd = jnp.concatenate([lp["ln1w"], lp["ln1b"], lp["ln2w"], lp["ln2b"],
                          lp["ln3w"], lp["ln3b"], lp["bq"], bk, bv, lp["bo"]],
                         axis=0).astype(jnp.float32)
    vh = jnp.concatenate([lp["b1"], lp["lnhw"], lp["lnhb"]], axis=0).astype(jnp.float32)
    return dict(
        vd=vd, vh=vh,
        w1=lp["w1"].astype(cd), w2=lp["w2"].astype(cd),
        fsmn=lp["fsmnw"].astype(jnp.float32),
        wq=lp["wq"].astype(cd), wk=wk.astype(cd), wv=wv.astype(cd),
        wo=lp["wo"].reshape(n_heads, dk, D).astype(cd),
    )


def prepare_sanm_stack(layer_params, n_heads):
    per = [prepare_sanm_layer(lp, n_heads) for lp in layer_params]
    return [jnp.stack([p[k] for p in per]) for k in SANM_STACK_ORDER]


def _per_layer_spec(a):
    nd = a.ndim
    return pl.BlockSpec((1,) + tuple(a.shape[1:]),
                        lambda c, l, _nd=nd: (l,) + (0,) * (_nd - 1))


def _full_spec(a):
    nd = a.ndim
    return pl.BlockSpec(tuple(a.shape), lambda i, _nd=nd: (0,) * _nd)


# ----------------------------------------------------------------------------
# Wrappers (pallas_call plumbing)
# ----------------------------------------------------------------------------

def sanm_decoder_stack(x_flat, tmask_flat, mem_flat, mask_add, fsmn_mask,
                       stacked, *, n_heads, left, B, T, L, batch_chunks=1):
    """All `decoders` layers in one pallas_call; weights stream once per layer."""
    BT, D = x_flat.shape
    K = fsmn_mask.shape[0]
    n_layers = stacked[0].shape[0]
    assert B % batch_chunks == 0, "batch_chunks must divide the batch"
    Bc = B // batch_chunks
    BcT = Bc * T

    # Blocks whose index never changes along the layer axis (x, masks, memory)
    # are DMA'd only once per batch chunk by the pipeline.
    # TODO(synk): on v7x, mark these constant-index blocks pipeline_mode=pl.Buffered(1)
    # to reclaim their second VMEM buffer; use batch_chunks=2 there to feed both cores.
    data_specs = [
        pl.BlockSpec((BcT, D), lambda c, l: (c, 0)),                   # x (flattened rows)
        pl.BlockSpec((BcT, 1), lambda c, l: (c, 0)),                   # target valid mask
        pl.BlockSpec((Bc * L, D), lambda c, l: (c, 0)),                # encoder memory (bf16)
        pl.BlockSpec((n_heads, Bc, 1, L), lambda c, l: (0, c, 0, 0)),  # additive mem mask
        pl.BlockSpec((K, BcT, 1), lambda c, l: (0, c, 0)),             # FSMN zero-fill masks
    ]
    param_specs = [_per_layer_spec(p) for p in stacked]

    return pl.pallas_call(
        functools.partial(sanm_stack_kernel, n_heads=n_heads, left=left),
        out_shape=jax.ShapeDtypeStruct((BT, D), jnp.float32),
        grid=(batch_chunks, n_layers),
        in_specs=data_specs + param_specs,
        out_specs=pl.BlockSpec((BcT, D), lambda c, l: (c, 0)),
        scratch_shapes=[pltpu.VMEM((BcT, D), jnp.float32)],
        compiler_params=pltpu.CompilerParams(
            dimension_semantics=("parallel", "arbitrary"),
            vmem_limit_bytes=VMEM_LIMIT),
    )(x_flat, tmask_flat, mem_flat, mask_add, fsmn_mask, *stacked)


def ffn3_and_after_norm(x_flat, ffn_layers, an_w, an_b):
    """decoders3 (FFN(LN1(x)), no residual) + after_norm fused into the last call.

    One grid step over all B*T rows -> FFN weights streamed once, full MXU fill."""
    n = len(ffn_layers)
    for i, lp in enumerate(ffn_layers):
        last = (i == n - 1)
        vd_rows = [lp["ln1w"], lp["ln1b"]] + ([an_w, an_b] if last else [])
        vd = jnp.concatenate(vd_rows, axis=0).astype(jnp.float32)
        vh = jnp.concatenate([lp["b1"], lp["lnhw"], lp["lnhb"]], axis=0).astype(jnp.float32)
        args = (x_flat, vd, vh,
                lp["w1"].astype(COMPUTE_DTYPE), lp["w2"].astype(COMPUTE_DTYPE))
        out_dtype = COMPUTE_DTYPE if last else jnp.float32   # bf16 hand-off to the vocab matmul
        x_flat = pl.pallas_call(
            functools.partial(ffn3_kernel, apply_after_norm=last),
            out_shape=jax.ShapeDtypeStruct(x_flat.shape, out_dtype),
            grid=(1,),
            in_specs=[_full_spec(a) for a in args],
            out_specs=pl.BlockSpec(tuple(x_flat.shape), lambda i: (0, 0)),
            compiler_params=pltpu.CompilerParams(
                dimension_semantics=("arbitrary",),
                vmem_limit_bytes=VMEM_LIMIT),
        )(*args)
    return x_flat


def output_projection(x_flat, out_w, out_b, tile_v_max=1024):
    """after_norm output (bf16, B*T rows) @ (D, V): vocab-tiled, weight streamed once."""
    BT, D = x_flat.shape
    V = out_w.shape[1]
    tile_v = min(tile_v_max, _round_up(V, 128))       # lane-dense output tiles
    Vp = _round_up(V, tile_v)                         # zero-pad V; slice logits after
    w = out_w.astype(COMPUTE_DTYPE)
    b = out_b.astype(jnp.float32)
    if Vp != V:
        w = jnp.pad(w, ((0, 0), (0, Vp - V)))
        b = jnp.pad(b, ((0, 0), (0, Vp - V)))
    n_v = Vp // tile_v
    logits = pl.pallas_call(
        output_kernel,
        out_shape=jax.ShapeDtypeStruct((BT, Vp), jnp.float32),
        grid=(n_v,),
        in_specs=[
            pl.BlockSpec((BT, D), lambda j: (0, 0)),        # hidden: constant index -> one DMA
            pl.BlockSpec((D, tile_v), lambda j: (0, j)),
            pl.BlockSpec((1, tile_v), lambda j: (0, j)),
        ],
        out_specs=pl.BlockSpec((BT, tile_v), lambda j: (0, j)),
        compiler_params=pltpu.CompilerParams(
            dimension_semantics=("parallel",),
            vmem_limit_bytes=VMEM_LIMIT),
    )(x_flat, w, b)
    return logits[:, :V] if Vp != V else logits


def sanm_decoder_forward(hs_pad, hlens, ys_in_pad, ys_in_lens, params,
                         n_heads, kernel_size, sanm_shfit=0, batch_chunks=1):
    """Mirrors SANMDecoder.forward (chunk_mask=None, eval mode)."""
    B, T, D = ys_in_pad.shape
    L = hs_pad.shape[1]
    K = kernel_size
    # TODO(synk): verify the sanm_shfit>0 asymmetric padding path against the
    # PyTorch pad_fn once with a nonzero shift (only shift=0 exercised here).
    left = (kernel_size - 1) // 2 + (sanm_shfit if sanm_shfit > 0 else 0)

    # make_pad_mask -> 1/0 valid masks (used multiplicatively in forward_fsmn)
    t_idx = jnp.arange(T)
    tmask_flat = (t_idx[None, :] < ys_in_lens[:, None]).astype(jnp.float32).reshape(B * T, 1)
    mvalid = jnp.arange(L)[None, :] < hlens[:, None]                       # (B, L)
    # Hoisted additive memory mask, pre-tiled per head (g = h*Bc + b ordering).
    mask_add = jnp.broadcast_to(
        jnp.where(mvalid, 0.0, NEG_INF).astype(jnp.float32)[None, :, None, :],
        (n_heads, B, 1, L))
    # Layer-invariant FSMN zero-fill masks over the flattened (batch, time) rows.
    offs = jnp.arange(K) - left
    pos = t_idx[None, :] + offs[:, None]                                   # (K, T)
    fvalid = jnp.logical_and(pos >= 0, pos < T).astype(jnp.float32)
    fsmn_mask = jnp.tile(fvalid[:, None, :], (1, B, 1)).reshape(K, B * T, 1)

    # NOTE: SANMDecoder.forward never applies self.embed; ys_in_pad is already (B, T, D) float.
    x = ys_in_pad.astype(jnp.float32).reshape(B * T, D)
    mem = hs_pad.astype(COMPUTE_DTYPE).reshape(B * L, D)     # bf16 MXU operand stream

    stacked = prepare_sanm_stack(params["decoders"], n_heads)
    x = sanm_decoder_stack(x, tmask_flat, mem, mask_add, fsmn_mask, stacked,
                           n_heads=n_heads, left=left, B=B, T=T, L=L,
                           batch_chunks=batch_chunks)
    x = ffn3_and_after_norm(x, params["decoders3"],
                            params["after_norm_w"], params["after_norm_b"])
    logits = output_projection(x, params["out_w"], params["out_b"])
    return logits.reshape(B, T, -1)


# ----------------------------------------------------------------------------
# Deterministic synthetic parameter initialization (torch-like layouts, f32)
# ----------------------------------------------------------------------------

def _randw(key, shape, scale=0.05):
    return jax.random.normal(key, shape, jnp.float32) * scale


def init_sanm_layer_params(key, D, H, K):
    ks = jax.random.split(key, 6)
    return dict(
        ln1w=jnp.ones((1, D), jnp.float32), ln1b=jnp.zeros((1, D), jnp.float32),
        w1=_randw(ks[0], (D, H)), b1=jnp.zeros((1, H), jnp.float32),
        lnhw=jnp.ones((1, H), jnp.float32), lnhb=jnp.zeros((1, H), jnp.float32),
        w2=_randw(ks[1], (H, D)),
        ln2w=jnp.ones((1, D), jnp.float32), ln2b=jnp.zeros((1, D), jnp.float32),
        fsmnw=_randw(ks[2], (K, 1, D), scale=0.1),   # depthwise taps (torch (D,1,K) transposed)
        ln3w=jnp.ones((1, D), jnp.float32), ln3b=jnp.zeros((1, D), jnp.float32),
        wq=_randw(ks[3], (D, D)), bq=jnp.zeros((1, D), jnp.float32),
        wkv=_randw(ks[4], (D, 2 * D)), bkv=jnp.zeros((1, 2 * D), jnp.float32),
        wo=_randw(ks[5], (D, D)), bo=jnp.zeros((1, D), jnp.float32),
    )


def init_ffn_layer_params(key, D, H):
    ks = jax.random.split(key, 2)
    return dict(
        ln1w=jnp.ones((1, D), jnp.float32), ln1b=jnp.zeros((1, D), jnp.float32),
        w1=_randw(ks[0], (D, H)), b1=jnp.zeros((1, H), jnp.float32),
        lnhw=jnp.ones((1, H), jnp.float32), lnhb=jnp.zeros((1, H), jnp.float32),
        w2=_randw(ks[1], (H, D)),
    )


def init_decoder_params(key, D, H, V, K, att_layer_num):
    keys = jax.random.split(key, att_layer_num + 2)
    return dict(
        decoders=[init_sanm_layer_params(keys[i], D, H, K) for i in range(att_layer_num)],
        decoders3=[init_ffn_layer_params(keys[att_layer_num], D, H)],
        after_norm_w=jnp.ones((1, D), jnp.float32),
        after_norm_b=jnp.zeros((1, D), jnp.float32),
        out_w=_randw(keys[att_layer_num + 1], (D, V)),
        out_b=jnp.zeros((1, V), jnp.float32),
    )


# ----------------------------------------------------------------------------
# Main
# ----------------------------------------------------------------------------

if __name__ == "__main__":
    B, T_OUT, T_IN, D, H, HEADS, VOCAB, KSIZE = 2, 8, 16, 32, 64, 4, 64, 11
    ATT_LAYERS = 2  # small demo-sized stack (module default is 16)

    key = jax.random.PRNGKey(0)
    k_mem, k_tgt, k_par = jax.random.split(key, 3)

    hs_pad = jax.random.normal(k_mem, (B, T_IN, D), jnp.float32)      # encoded memory
    ys_in_pad = jax.random.normal(k_tgt, (B, T_OUT, D), jnp.float32)  # decoder input features
    hlens = jnp.array([T_IN, T_IN - 3], jnp.int32)
    ys_in_lens = jnp.array([T_OUT, T_OUT - 2], jnp.int32)

    params = init_decoder_params(k_par, D, H, VOCAB, KSIZE, ATT_LAYERS)

    # TODO(synk): dropout layers are identity (inference mode); the nn.Embedding from
    # __init__ is unused by SANMDecoder.forward and therefore not implemented.
    out = sanm_decoder_forward(hs_pad, hlens, ys_in_pad, ys_in_lens, params,
                               n_heads=HEADS, kernel_size=KSIZE, sanm_shfit=0,
                               batch_chunks=1)
    out = jax.block_until_ready(out)
    assert out.shape == (B, T_OUT, VOCAB)
    assert bool(jnp.all(jnp.isfinite(out)))
    print("KERNEL_OK")
</pallas_src>

<mosaic_0001>
module attributes {stable_mosaic.version = 11 : i64} {
  func.func @sanm_stack_kernel(%arg0: i32, %arg1: i32, %arg2: memref<16x32xf32, #tpu.memory_space<vmem>>, %arg3: memref<16x1xf32, #tpu.memory_space<vmem>>, %arg4: memref<32x32xbf16, #tpu.memory_space<vmem>>, %arg5: memref<4x2x1x16xf32, #tpu.memory_space<vmem>>, %arg6: memref<11x16x1xf32, #tpu.memory_space<vmem>>, %arg7: memref<1x10x32xf32, #tpu.memory_space<vmem>>, %arg8: memref<1x3x64xf32, #tpu.memory_space<vmem>>, %arg9: memref<1x32x64xbf16, #tpu.memory_space<vmem>>, %arg10: memref<1x64x32xbf16, #tpu.memory_space<vmem>>, %arg11: memref<1x11x1x32xf32, #tpu.memory_space<vmem>>, %arg12: memref<1x32x32xbf16, #tpu.memory_space<vmem>>, %arg13: memref<1x32x32xbf16, #tpu.memory_space<vmem>>, %arg14: memref<1x32x32xbf16, #tpu.memory_space<vmem>>, %arg15: memref<1x4x8x32xbf16, #tpu.memory_space<vmem>>, %arg16: memref<16x32xf32, #tpu.memory_space<vmem>>, %arg17: memref<16x32xf32, #tpu.memory_space<vmem>>) attributes {dimension_semantics = [#tpu.dimension_semantics<parallel>, #tpu.dimension_semantics<arbitrary>], iteration_bounds = array<i64: 1, 2>, scalar_prefetch = 0 : i64, scratch_operands = 1 : i64, tpu.core_type = #tpu.core_type<tc>, window_params = [{transform_indices = @transform_0, window_bounds = array<i64: 16, 32>}, {transform_indices = @transform_1, window_bounds = array<i64: 16, 1>}, {transform_indices = @transform_2, window_bounds = array<i64: 32, 32>}, {transform_indices = @transform_3, window_bounds = array<i64: 4, 2, 1, 16>}, {transform_indices = @transform_4, window_bounds = array<i64: 11, 16, 1>}, {transform_indices = @transform_5, window_bounds = array<i64: 1, 10, 32>}, {transform_indices = @transform_6, window_bounds = array<i64: 1, 3, 64>}, {transform_indices = @transform_7, window_bounds = array<i64: 1, 32, 64>}, {transform_indices = @transform_8, window_bounds = array<i64: 1, 64, 32>}, {transform_indices = @transform_9, window_bounds = array<i64: 1, 11, 1, 32>}, {transform_indices = @transform_10, window_bounds = array<i64: 1, 32, 32>}, {transform_indices = @transform_11, window_bounds = array<i64: 1, 32, 32>}, {transform_indices = @transform_12, window_bounds = array<i64: 1, 32, 32>}, {transform_indices = @transform_13, window_bounds = array<i64: 1, 4, 8, 32>}, {transform_indices = @transform_14, window_bounds = array<i64: 16, 32>}]} {
    %c0_i32 = arith.constant 0 : i32
    %0 = arith.cmpi eq, %arg1, %c0_i32 : i32
    %1 = arith.extui %0 : i1 to i32
    %c0_i32_0 = arith.constant 0 : i32
    %2 = arith.cmpi ne, %1, %c0_i32_0 : i32
    scf.if %2 {
      %c0_79 = arith.constant 0 : index
      %c0_80 = arith.constant 0 : index
      %322 = vector.load %arg2[%c0_79, %c0_80] : memref<16x32xf32, #tpu.memory_space<vmem>>, vector<16x32xf32>
      %c0_81 = arith.constant 0 : index
      %c0_82 = arith.constant 0 : index
      %323 = vector.load %arg17[%c0_81, %c0_82] : memref<16x32xf32, #tpu.memory_space<vmem>>, vector<16x32xf32>
      tpu.vector_store %arg17[%c0_81, %c0_82], %322 {strides = array<i32>} : memref<16x32xf32, #tpu.memory_space<vmem>>, vector<16x32xf32>,
    } else {
    }
    %c0 = arith.constant 0 : index
    %c0_1 = arith.constant 0 : index
    %3 = vector.load %arg17[%c0, %c0_1] : memref<16x32xf32, #tpu.memory_space<vmem>>, vector<16x32xf32>
    %c0_2 = arith.constant 0 : index
    %c0_3 = arith.constant 0 : index
    %4 = vector.load %arg3[%c0_2, %c0_3] : memref<16x1xf32, #tpu.memory_space<vmem>>, vector<16x1xf32>
    %c0_4 = arith.constant 0 : index
    %c0_5 = arith.constant 0 : index
    %c0_6 = arith.constant 0 : index
    %5 = vector.load %arg7[%c0_4, %c0_5, %c0_6] : memref<1x10x32xf32, #tpu.memory_space<vmem>>, vector<1x10x32xf32>
    %6 = vector.shape_cast %5 : vector<1x10x32xf32> to vector<10x32xf32>
    %c0_7 = arith.constant 0 : index
    %c0_8 = arith.constant 0 : index
    %c0_9 = arith.constant 0 : index
    %7 = vector.load %arg8[%c0_7, %c0_8, %c0_9] : memref<1x3x64xf32, #tpu.memory_space<vmem>>, vector<1x3x64xf32>
    %8 = vector.shape_cast %7 : vector<1x3x64xf32> to vector<3x64xf32>
    %9 = vector.extract_strided_slice %6 {offsets = [0, 0], sizes = [1, 32], strides = [1, 1]} : vector<10x32xf32> to vector<1x32xf32>
    %10 = vector.extract_strided_slice %6 {offsets = [1, 0], sizes = [1, 32], strides = [1, 1]} : vector<10x32xf32> to vector<1x32xf32>
    %cst = arith.constant dense<0.000000e+00> : vector<16xf32>
    %11 = vector.multi_reduction <add>, %3, %cst [1] : vector<16x32xf32> to vector<16xf32>
    %12 = vector.shape_cast %11 : vector<16xf32> to vector<16x1xf32>
    %cst_10 = arith.constant 3.200000e+01 : f32
    %13 = vector.broadcast %cst_10 : f32 to vector<16x1xf32>
    %14 = arith.divf %12, %13 : vector<16x1xf32>
    %15 = vector.broadcast %14 : vector<16x1xf32> to vector<16x32xf32>
    %16 = arith.subf %3, %15 : vector<16x32xf32>
    %17 = arith.mulf %16, %16 : vector<16x32xf32>
    %cst_11 = arith.constant dense<0.000000e+00> : vector<16xf32>
    %18 = vector.multi_reduction <add>, %17, %cst_11 [1] : vector<16x32xf32> to vector<16xf32>
    %19 = vector.shape_cast %18 : vector<16xf32> to vector<16x1xf32>
    %cst_12 = arith.constant 3.200000e+01 : f32
    %20 = vector.broadcast %cst_12 : f32 to vector<16x1xf32>
    %21 = arith.divf %19, %20 : vector<16x1xf32>
    %22 = vector.broadcast %14 : vector<16x1xf32> to vector<16x32xf32>
    %23 = arith.subf %3, %22 : vector<16x32xf32>
    %cst_13 = arith.constant 9.99999996E-13 : f32
    %24 = vector.broadcast %cst_13 : f32 to vector<16x1xf32>
    %25 = arith.addf %21, %24 : vector<16x1xf32>
    %26 = math.rsqrt %25 : vector<16x1xf32>
    %27 = vector.broadcast %26 : vector<16x1xf32> to vector<16x32xf32>
    %28 = arith.mulf %23, %27 : vector<16x32xf32>
    %29 = vector.broadcast %9 : vector<1x32xf32> to vector<16x32xf32>
    %30 = arith.mulf %28, %29 : vector<16x32xf32>
    %31 = vector.broadcast %10 : vector<1x32xf32> to vector<16x32xf32>
    %32 = arith.addf %30, %31 : vector<16x32xf32>
    %c0_14 = arith.constant 0 : index
    %c0_15 = arith.constant 0 : index
    %c0_16 = arith.constant 0 : index
    %33 = vector.load %arg9[%c0_14, %c0_15, %c0_16] : memref<1x32x64xbf16, #tpu.memory_space<vmem>>, vector<1x32x64xbf16>
    %34 = vector.shape_cast %33 : vector<1x32x64xbf16> to vector<32x64xbf16>
    %35 = arith.truncf %32 : vector<16x32xf32> to vector<16x32xbf16>
    %cst_17 = arith.constant dense<0.000000e+00> : vector<16x64xf32>
    %36 = tpu.matmul %35, %34, %cst_17 {dimension_numbers = #tpu.dot_dimension_numbers<[1], [0], [0], [1], [0, 0, 1, 1], [], []>} : vector<16x32xbf16>, vector<32x64xbf16>, vector<16x64xf32> -> vector<16x64xf32>
    %37 = vector.extract_strided_slice %8 {offsets = [0, 0], sizes = [1, 64], strides = [1, 1]} : vector<3x64xf32> to vector<1x64xf32>
    %38 = vector.broadcast %37 : vector<1x64xf32> to vector<16x64xf32>
    %39 = arith.addf %36, %38 : vector<16x64xf32>
    %cst_18 = arith.constant 0.000000e+00 : f32
    %40 = vector.broadcast %cst_18 : f32 to vector<16x64xf32>
    %41 = arith.maximumf %39, %40 : vector<16x64xf32>
    %42 = vector.extract_strided_slice %8 {offsets = [1, 0], sizes = [1, 64], strides = [1, 1]} : vector<3x64xf32> to vector<1x64xf32>
    %43 = vector.extract_strided_slice %8 {offsets = [2, 0], sizes = [1, 64], strides = [1, 1]} : vector<3x64xf32> to vector<1x64xf32>
    %cst_19 = arith.constant dense<0.000000e+00> : vector<16xf32>
    %44 = vector.multi_reduction <add>, %41, %cst_19 [1] : vector<16x64xf32> to vector<16xf32>
    %45 = vector.shape_cast %44 : vector<16xf32> to vector<16x1xf32>
    %cst_20 = arith.constant 6.400000e+01 : f32
    %46 = vector.broadcast %cst_20 : f32 to vector<16x1xf32>
    %47 = arith.divf %45, %46 : vector<16x1xf32>
    %48 = vector.broadcast %47 : vector<16x1xf32> to vector<16x64xf32>
    %49 = arith.subf %41, %48 : vector<16x64xf32>
    %50 = arith.mulf %49, %49 : vector<16x64xf32>
    %cst_21 = arith.constant dense<0.000000e+00> : vector<16xf32>
    %51 = vector.multi_reduction <add>, %50, %cst_21 [1] : vector<16x64xf32> to vector<16xf32>
    %52 = vector.shape_cast %51 : vector<16xf32> to vector<16x1xf32>
    %cst_22 = arith.constant 6.400000e+01 : f32
    %53 = vector.broadcast %cst_22 : f32 to vector<16x1xf32>
    %54 = arith.divf %52, %53 : vector<16x1xf32>
    %55 = vector.broadcast %47 : vector<16x1xf32> to vector<16x64xf32>
    %56 = arith.subf %41, %55 : vector<16x64xf32>
    %cst_23 = arith.constant 9.99999996E-13 : f32
    %57 = vector.broadcast %cst_23 : f32 to vector<16x1xf32>
    %58 = arith.addf %54, %57 : vector<16x1xf32>
    %59 = math.rsqrt %58 : vector<16x1xf32>
    %60 = vector.broadcast %59 : vector<16x1xf32> to vector<16x64xf32>
    %61 = arith.mulf %56, %60 : vector<16x64xf32>
    %62 = vector.broadcast %42 : vector<1x64xf32> to vector<16x64xf32>
    %63 = arith.mulf %61, %62 : vector<16x64xf32>
    %64 = vector.broadcast %43 : vector<1x64xf32> to vector<16x64xf32>
    %65 = arith.addf %63, %64 : vector<16x64xf32>
    %c0_24 = arith.constant 0 : index
    %c0_25 = arith.constant 0 : index
    %c0_26 = arith.constant 0 : index
    %66 = vector.load %arg10[%c0_24, %c0_25, %c0_26] : memref<1x64x32xbf16, #tpu.memory_space<vmem>>, vector<1x64x32xbf16>
    %67 = vector.shape_cast %66 : vector<1x64x32xbf16> to vector<64x32xbf16>
    %68 = arith.truncf %65 : vector<16x64xf32> to vector<16x64xbf16>
    %cst_27 = arith.constant dense<0.000000e+00> : vector<16x32xf32>
    %69 = tpu.matmul %68, %67, %cst_27 {dimension_numbers = #tpu.dot_dimension_numbers<[1], [0], [0], [1], [0, 0, 1, 1], [], []>} : vector<16x64xbf16>, vector<64x32xbf16>, vector<16x32xf32> -> vector<16x32xf32>
    %70 = vector.extract_strided_slice %6 {offsets = [2, 0], sizes = [1, 32], strides = [1, 1]} : vector<10x32xf32> to vector<1x32xf32>
    %71 = vector.extract_strided_slice %6 {offsets = [3, 0], sizes = [1, 32], strides = [1, 1]} : vector<10x32xf32> to vector<1x32xf32>
    %cst_28 = arith.constant dense<0.000000e+00> : vector<16xf32>
    %72 = vector.multi_reduction <add>, %69, %cst_28 [1] : vector<16x32xf32> to vector<16xf32>
    %73 = vector.shape_cast %72 : vector<16xf32> to vector<16x1xf32>
    %cst_29 = arith.constant 3.200000e+01 : f32
    %74 = vector.broadcast %cst_29 : f32 to vector<16x1xf32>
    %75 = arith.divf %73, %74 : vector<16x1xf32>
    %76 = vector.broadcast %75 : vector<16x1xf32> to vector<16x32xf32>
    %77 = arith.subf %69, %76 : vector<16x32xf32>
    %78 = arith.mulf %77, %77 : vector<16x32xf32>
    %cst_30 = arith.constant dense<0.000000e+00> : vector<16xf32>
    %79 = vector.multi_reduction <add>, %78, %cst_30 [1] : vector<16x32xf32> to vector<16xf32>
    %80 = vector.shape_cast %79 : vector<16xf32> to vector<16x1xf32>
    %cst_31 = arith.constant 3.200000e+01 : f32
    %81 = vector.broadcast %cst_31 : f32 to vector<16x1xf32>
    %82 = arith.divf %80, %81 : vector<16x1xf32>
    %83 = vector.broadcast %75 : vector<16x1xf32> to vector<16x32xf32>
    %84 = arith.subf %69, %83 : vector<16x32xf32>
    %cst_32 = arith.constant 9.99999996E-13 : f32
    %85 = vector.broadcast %cst_32 : f32 to vector<16x1xf32>
    %86 = arith.addf %82, %85 : vector<16x1xf32>
    %87 = math.rsqrt %86 : vector<16x1xf32>
    %88 = vector.broadcast %87 : vector<16x1xf32> to vector<16x32xf32>
    %89 = arith.mulf %84, %88 : vector<16x32xf32>
    %90 = vector.broadcast %70 : vector<1x32xf32> to vector<16x32xf32>
    %91 = arith.mulf %89, %90 : vector<16x32xf32>
    %92 = vector.broadcast %71 : vector<1x32xf32> to vector<16x32xf32>
    %93 = arith.addf %91, %92 : vector<16x32xf32>
    %94 = vector.broadcast %4 : vector<16x1xf32> to vector<16x32xf32>
    %95 = arith.mulf %93, %94 : vector<16x32xf32>
    %c0_33 = arith.constant 0 : index
    %c0_34 = arith.constant 0 : index
    %c0_35 = arith.constant 0 : index
    %c0_36 = arith.constant 0 : index
    %96 = vector.load %arg11[%c0_33, %c0_34, %c0_35, %c0_36] : memref<1x11x1x32xf32, #tpu.memory_space<vmem>>, vector<1x11x1x32xf32>
    %97 = vector.shape_cast %96 : vector<1x11x1x32xf32> to vector<11x1x32xf32>
    %c0_37 = arith.constant 0 : index
    %c0_38 = arith.constant 0 : index
    %c0_39 = arith.constant 0 : index
    %98 = vector.load %arg6[%c0_37, %c0_38, %c0_39] : memref<11x16x1xf32, #tpu.memory_space<vmem>>, vector<11x16x1xf32>
    %cst_40 = arith.constant 0.000000e+00 : f32
    %99 = vector.broadcast %cst_40 : f32 to vector<16x32xf32>
    %c5_i32 = arith.constant 5 : i32
    %100 = tpu.dynamic_rotate %95 by %c5_i32 dim 0 : vector<16x32xf32>, i32 -> vector<16x32xf32>
    %101 = vector.extract_strided_slice %98 {offsets = [0, 0, 0], sizes = [1, 16, 1], strides = [1, 1, 1]} : vector<11x16x1xf32> to vector<1x16x1xf32>
    %102 = vector.shape_cast %101 : vector<1x16x1xf32> to vector<16x1xf32>
    %103 = vector.broadcast %102 : vector<16x1xf32> to vector<16x32xf32>
    %104 = arith.mulf %100, %103 : vector<16x32xf32>
    %105 = vector.extract_strided_slice %97 {offsets = [0, 0, 0], sizes = [1, 1, 32], strides = [1, 1, 1]} : vector<11x1x32xf32> to vector<1x1x32xf32>
    %106 = vector.shape_cast %105 : vector<1x1x32xf32> to vector<1x32xf32>
    %107 = vector.broadcast %106 : vector<1x32xf32> to vector<16x32xf32>
    %108 = arith.mulf %104, %107 : vector<16x32xf32>
    %109 = arith.addf %99, %108 : vector<16x32xf32>
    %c4_i32 = arith.constant 4 : i32
    %110 = tpu.dynamic_rotate %95 by %c4_i32 dim 0 : vector<16x32xf32>, i32 -> vector<16x32xf32>
    %111 = vector.extract_strided_slice %98 {offsets = [1, 0, 0], sizes = [1, 16, 1], strides = [1, 1, 1]} : vector<11x16x1xf32> to vector<1x16x1xf32>
    %112 = vector.shape_cast %111 : vector<1x16x1xf32> to vector<16x1xf32>
    %113 = vector.broadcast %112 : vector<16x1xf32> to vector<16x32xf32>
    %114 = arith.mulf %110, %113 : vector<16x32xf32>
    %115 = vector.extract_strided_slice %97 {offsets = [1, 0, 0], sizes = [1, 1, 32], strides = [1, 1, 1]} : vector<11x1x32xf32> to vector<1x1x32xf32>
    %116 = vector.shape_cast %115 : vector<1x1x32xf32> to vector<1x32xf32>
    %117 = vector.broadcast %116 : vector<1x32xf32> to vector<16x32xf32>
    %118 = arith.mulf %114, %117 : vector<16x32xf32>
    %119 = arith.addf %109, %118 : vector<16x32xf32>
    %c3_i32 = arith.constant 3 : i32
    %120 = tpu.dynamic_rotate %95 by %c3_i32 dim 0 : vector<16x32xf32>, i32 -> vector<16x32xf32>
    %121 = vector.extract_strided_slice %98 {offsets = [2, 0, 0], sizes = [1, 16, 1], strides = [1, 1, 1]} : vector<11x16x1xf32> to vector<1x16x1xf32>
    %122 = vector.shape_cast %121 : vector<1x16x1xf32> to vector<16x1xf32>
    %123 = vector.broadcast %122 : vector<16x1xf32> to vector<16x32xf32>
    %124 = arith.mulf %120, %123 : vector<16x32xf32>
    %125 = vector.extract_strided_slice %97 {offsets = [2, 0, 0], sizes = [1, 1, 32], strides = [1, 1, 1]} : vector<11x1x32xf32> to vector<1x1x32xf32>
    %126 = vector.shape_cast %125 : vector<1x1x32xf32> to vector<1x32xf32>
    %127 = vector.broadcast %126 : vector<1x32xf32> to vector<16x32xf32>
    %128 = arith.mulf %124, %127 : vector<16x32xf32>
    %129 = arith.addf %119, %128 : vector<16x32xf32>
    %c2_i32 = arith.constant 2 : i32
    %130 = tpu.dynamic_rotate %95 by %c2_i32 dim 0 : vector<16x32xf32>, i32 -> vector<16x32xf32>
    %131 = vector.extract_strided_slice %98 {offsets = [3, 0, 0], sizes = [1, 16, 1], strides = [1, 1, 1]} : vector<11x16x1xf32> to vector<1x16x1xf32>
    %132 = vector.shape_cast %131 : vector<1x16x1xf32> to vector<16x1xf32>
    %133 = vector.broadcast %132 : vector<16x1xf32> to vector<16x32xf32>
    %134 = arith.mulf %130, %133 : vector<16x32xf32>
    %135 = vector.extract_strided_slice %97 {offsets = [3, 0, 0], sizes = [1, 1, 32], strides = [1, 1, 1]} : vector<11x1x32xf32> to vector<1x1x32xf32>
    %136 = vector.shape_cast %135 : vector<1x1x32xf32> to vector<1x32xf32>
    %137 = vector.broadcast %136 : vector<1x32xf32> to vector<16x32xf32>
    %138 = arith.mulf %134, %137 : vector<16x32xf32>
    %139 = arith.addf %129, %138 : vector<16x32xf32>
    %c1_i32 = arith.constant 1 : i32
    %140 = tpu.dynamic_rotate %95 by %c1_i32 dim 0 : vector<16x32xf32>, i32 -> vector<16x32xf32>
    %141 = vector.extract_strided_slice %98 {offsets = [4, 0, 0], sizes = [1, 16, 1], strides = [1, 1, 1]} : vector<11x16x1xf32> to vector<1x16x1xf32>
    %142 = vector.shape_cast %141 : vector<1x16x1xf32> to vector<16x1xf32>
    %143 = vector.broadcast %142 : vector<16x1xf32> to vector<16x32xf32>
    %144 = arith.mulf %140, %143 : vector<16x32xf32>
    %145 = vector.extract_strided_slice %97 {offsets = [4, 0, 0], sizes = [1, 1, 32], strides = [1, 1, 1]} : vector<11x1x32xf32> to vector<1x1x32xf32>
    %146 = vector.shape_cast %145 : vector<1x1x32xf32> to vector<1x32xf32>
    %147 = vector.broadcast %146 : vector<1x32xf32> to vector<16x32xf32>
    %148 = arith.mulf %144, %147 : vector<16x32xf32>
    %149 = arith.addf %139, %148 : vector<16x32xf32>
    %150 = vector.extract_strided_slice %97 {offsets = [5, 0, 0], sizes = [1, 1, 32], strides = [1, 1, 1]} : vector<11x1x32xf32> to vector<1x1x32xf32>
    %151 = vector.shape_cast %150 : vector<1x1x32xf32> to vector<1x32xf32>
    %152 = vector.broadcast %151 : vector<1x32xf32> to vector<16x32xf32>
    %153 = arith.mulf %95, %152 : vector<16x32xf32>
    %154 = arith.addf %149, %153 : vector<16x32xf32>
    %c15_i32 = arith.constant 15 : i32
    %155 = tpu.dynamic_rotate %95 by %c15_i32 dim 0 : vector<16x32xf32>, i32 -> vector<16x32xf32>
    %156 = vector.extract_strided_slice %98 {offsets = [6, 0, 0], sizes = [1, 16, 1], strides = [1, 1, 1]} : vector<11x16x1xf32> to vector<1x16x1xf32>
    %157 = vector.shape_cast %156 : vector<1x16x1xf32> to vector<16x1xf32>
    %158 = vector.broadcast %157 : vector<16x1xf32> to vector<16x32xf32>
    %159 = arith.mulf %155, %158 : vector<16x32xf32>
    %160 = vector.extract_strided_slice %97 {offsets = [6, 0, 0], sizes = [1, 1, 32], strides = [1, 1, 1]} : vector<11x1x32xf32> to vector<1x1x32xf32>
    %161 = vector.shape_cast %160 : vector<1x1x32xf32> to vector<1x32xf32>
    %162 = vector.broadcast %161 : vector<1x32xf32> to vector<16x32xf32>
    %163 = arith.mulf %159, %162 : vector<16x32xf32>
    %164 = arith.addf %154, %163 : vector<16x32xf32>
    %c14_i32 = arith.constant 14 : i32
    %165 = tpu.dynamic_rotate %95 by %c14_i32 dim 0 : vector<16x32xf32>, i32 -> vector<16x32xf32>
    %166 = vector.extract_strided_slice %98 {offsets = [7, 0, 0], sizes = [1, 16, 1], strides = [1, 1, 1]} : vector<11x16x1xf32> to vector<1x16x1xf32>
    %167 = vector.shape_cast %166 : vector<1x16x1xf32> to vector<16x1xf32>
    %168 = vector.broadcast %167 : vector<16x1xf32> to vector<16x32xf32>
    %169 = arith.mulf %165, %168 : vector<16x32xf32>
    %170 = vector.extract_strided_slice %97 {offsets = [7, 0, 0], sizes = [1, 1, 32], strides = [1, 1, 1]} : vector<11x1x32xf32> to vector<1x1x32xf32>
    %171 = vector.shape_cast %170 : vector<1x1x32xf32> to vector<1x32xf32>
    %172 = vector.broadcast %171 : vector<1x32xf32> to vector<16x32xf32>
    %173 = arith.mulf %169, %172 : vector<16x32xf32>
    %174 = arith.addf %164, %173 : vector<16x32xf32>
    %c13_i32 = arith.constant 13 : i32
    %175 = tpu.dynamic_rotate %95 by %c13_i32 dim 0 : vector<16x32xf32>, i32 -> vector<16x32xf32>
    %176 = vector.extract_strided_slice %98 {offsets = [8, 0, 0], sizes = [1, 16, 1], strides = [1, 1, 1]} : vector<11x16x1xf32> to vector<1x16x1xf32>
    %177 = vector.shape_cast %176 : vector<1x16x1xf32> to vector<16x1xf32>
    %178 = vector.broadcast %177 : vector<16x1xf32> to vector<16x32xf32>
    %179 = arith.mulf %175, %178 : vector<16x32xf32>
    %180 = vector.extract_strided_slice %97 {offsets = [8, 0, 0], sizes = [1, 1, 32], strides = [1, 1, 1]} : vector<11x1x32xf32> to vector<1x1x32xf32>
    %181 = vector.shape_cast %180 : vector<1x1x32xf32> to vector<1x32xf32>
    %182 = vector.broadcast %181 : vector<1x32xf32> to vector<16x32xf32>
    %183 = arith.mulf %179, %182 : vector<16x32xf32>
    %184 = arith.addf %174, %183 : vector<16x32xf32>
    %c12_i32 = arith.constant 12 : i32
    %185 = tpu.dynamic_rotate %95 by %c12_i32 dim 0 : vector<16x32xf32>, i32 -> vector<16x32xf32>
    %186 = vector.extract_strided_slice %98 {offsets = [9, 0, 0], sizes = [1, 16, 1], strides = [1, 1, 1]} : vector<11x16x1xf32> to vector<1x16x1xf32>
    %187 = vector.shape_cast %186 : vector<1x16x1xf32> to vector<16x1xf32>
    %188 = vector.broadcast %187 : vector<16x1xf32> to vector<16x32xf32>
    %189 = arith.mulf %185, %188 : vector<16x32xf32>
    %190 = vector.extract_strided_slice %97 {offsets = [9, 0, 0], sizes = [1, 1, 32], strides = [1, 1, 1]} : vector<11x1x32xf32> to vector<1x1x32xf32>
    %191 = vector.shape_cast %190 : vector<1x1x32xf32> to vector<1x32xf32>
    %192 = vector.broadcast %191 : vector<1x32xf32> to vector<16x32xf32>
    %193 = arith.mulf %189, %192 : vector<16x32xf32>
    %194 = arith.addf %184, %193 : vector<16x32xf32>
    %c11_i32 = arith.constant 11 : i32
    %195 = tpu.dynamic_rotate %95 by %c11_i32 dim 0 : vector<16x32xf32>, i32 -> vector<16x32xf32>
    %196 = vector.extract_strided_slice %98 {offsets = [10, 0, 0], sizes = [1, 16, 1], strides = [1, 1, 1]} : vector<11x16x1xf32> to vector<1x16x1xf32>
    %197 = vector.shape_cast %196 : vector<1x16x1xf32> to vector<16x1xf32>
    %198 = vector.broadcast %197 : vector<16x1xf32> to vector<16x32xf32>
    %199 = arith.mulf %195, %198 : vector<16x32xf32>
    %200 = vector.extract_strided_slice %97 {offsets = [10, 0, 0], sizes = [1, 1, 32], strides = [1, 1, 1]} : vector<11x1x32xf32> to vector<1x1x32xf32>
    %201 = vector.shape_cast %200 : vector<1x1x32xf32> to vector<1x32xf32>
    %202 = vector.broadcast %201 : vector<1x32xf32> to vector<16x32xf32>
    %203 = arith.mulf %199, %202 : vector<16x32xf32>
    %204 = arith.addf %194, %203 : vector<16x32xf32>
    %205 = arith.addf %204, %95 : vector<16x32xf32>
    %206 = vector.broadcast %4 : vector<16x1xf32> to vector<16x32xf32>
    %207 = arith.mulf %205, %206 : vector<16x32xf32>
    %208 = arith.addf %3, %207 : vector<16x32xf32>
    %209 = vector.extract_strided_slice %6 {offsets = [4, 0], sizes = [1, 32], strides = [1, 1]} : vector<10x32xf32> to vector<1x32xf32>
    %210 = vector.extract_strided_slice %6 {offsets = [5, 0], sizes = [1, 32], strides = [1, 1]} : vector<10x32xf32> to vector<1x32xf32>
    %cst_41 = arith.constant dense<0.000000e+00> : vector<16xf32>
    %211 = vector.multi_reduction <add>, %208, %cst_41 [1] : vector<16x32xf32> to vector<16xf32>
    %212 = vector.shape_cast %211 : vector<16xf32> to vector<16x1xf32>
    %cst_42 = arith.constant 3.200000e+01 : f32
    %213 = vector.broadcast %cst_42 : f32 to vector<16x1xf32>
    %214 = arith.divf %212, %213 : vector<16x1xf32>
    %215 = vector.broadcast %214 : vector<16x1xf32> to vector<16x32xf32>
    %216 = arith.subf %208, %215 : vector<16x32xf32>
    %217 = arith.mulf %216, %216 : vector<16x32xf32>
    %cst_43 = arith.constant dense<0.000000e+00> : vector<16xf32>
    %218 = vector.multi_reduction <add>, %217, %cst_43 [1] : vector<16x32xf32> to vector<16xf32>
    %219 = vector.shape_cast %218 : vector<16xf32> to vector<16x1xf32>
    %cst_44 = arith.constant 3.200000e+01 : f32
    %220 = vector.broadcast %cst_44 : f32 to vector<16x1xf32>
    %221 = arith.divf %219, %220 : vector<16x1xf32>
    %222 = vector.broadcast %214 : vector<16x1xf32> to vector<16x32xf32>
    %223 = arith.subf %208, %222 : vector<16x32xf32>
    %cst_45 = arith.constant 9.99999996E-13 : f32
    %224 = vector.broadcast %cst_45 : f32 to vector<16x1xf32>
    %225 = arith.addf %221, %224 : vector<16x1xf32>
    %226 = math.rsqrt %225 : vector<16x1xf32>
    %227 = vector.broadcast %226 : vector<16x1xf32> to vector<16x32xf32>
    %228 = arith.mulf %223, %227 : vector<16x32xf32>
    %229 = vector.broadcast %209 : vector<1x32xf32> to vector<16x32xf32>
    %230 = arith.mulf %228, %229 : vector<16x32xf32>
    %231 = vector.broadcast %210 : vector<1x32xf32> to vector<16x32xf32>
    %232 = arith.addf %230, %231 : vector<16x32xf32>
    %c0_46 = arith.constant 0 : index
    %c0_47 = arith.constant 0 : index
    %c0_48 = arith.constant 0 : index
    %233 = vector.load %arg12[%c0_46, %c0_47, %c0_48] : memref<1x32x32xbf16, #tpu.memory_space<vmem>>, vector<1x32x32xbf16>
    %234 = vector.shape_cast %233 : vector<1x32x32xbf16> to vector<32x32xbf16>
    %235 = arith.truncf %232 : vector<16x32xf32> to vector<16x32xbf16>
    %cst_49 = arith.constant dense<0.000000e+00> : vector<16x32xf32>
    %236 = tpu.matmul %235, %234, %cst_49 {dimension_numbers = #tpu.dot_dimension_numbers<[1], [0], [0], [1], [0, 0, 1, 1], [], []>} : vector<16x32xbf16>, vector<32x32xbf16>, vector<16x32xf32> -> vector<16x32xf32>
    %237 = vector.extract_strided_slice %6 {offsets = [6, 0], sizes = [1, 32], strides = [1, 1]} : vector<10x32xf32> to vector<1x32xf32>
    %238 = vector.broadcast %237 : vector<1x32xf32> to vector<16x32xf32>
    %239 = arith.addf %236, %238 : vector<16x32xf32>
    %c0_50 = arith.constant 0 : index
    %c0_51 = arith.constant 0 : index
    %240 = vector.load %arg4[%c0_50, %c0_51] : memref<32x32xbf16, #tpu.memory_space<vmem>>, vector<32x32xbf16>
    %c0_52 = arith.constant 0 : index
    %c0_53 = arith.constant 0 : index
    %c0_54 = arith.constant 0 : index
    %241 = vector.load %arg13[%c0_52, %c0_53, %c0_54] : memref<1x32x32xbf16, #tpu.memory_space<vmem>>, vector<1x32x32xbf16>
    %242 = vector.shape_cast %241 : vector<1x32x32xbf16> to vector<32x32xbf16>
    %cst_55 = arith.constant dense<0.000000e+00> : vector<32x32xf32>
    %243 = tpu.matmul %240, %242, %cst_55 {dimension_numbers = #tpu.dot_dimension_numbers<[1], [0], [0], [1], [0, 0, 1, 1], [], []>} : vector<32x32xbf16>, vector<32x32xbf16>, vector<32x32xf32> -> vector<32x32xf32>
    %244 = vector.extract_strided_slice %6 {offsets = [7, 0], sizes = [1, 32], strides = [1, 1]} : vector<10x32xf32> to vector<1x32xf32>
    %245 = vector.broadcast %244 : vector<1x32xf32> to vector<32x32xf32>
    %246 = arith.addf %243, %245 : vector<32x32xf32>
    %c0_56 = arith.constant 0 : index
    %c0_57 = arith.constant 0 : index
    %c0_58 = arith.constant 0 : index
    %247 = vector.load %arg14[%c0_56, %c0_57, %c0_58] : memref<1x32x32xbf16, #tpu.memory_space<vmem>>, vector<1x32x32xbf16>
    %248 = vector.shape_cast %247 : vector<1x32x32xbf16> to vector<32x32xbf16>
    %cst_59 = arith.constant dense<0.000000e+00> : vector<32x32xf32>
    %249 = tpu.matmul %240, %248, %cst_59 {dimension_numbers = #tpu.dot_dimension_numbers<[1], [0], [0], [1], [0, 0, 1, 1], [], []>} : vector<32x32xbf16>, vector<32x32xbf16>, vector<32x32xf32> -> vector<32x32xf32>
    %250 = vector.extract_strided_slice %6 {offsets = [8, 0], sizes = [1, 32], strides = [1, 1]} : vector<10x32xf32> to vector<1x32xf32>
    %251 = vector.broadcast %250 : vector<1x32xf32> to vector<32x32xf32>
    %252 = arith.addf %249, %251 : vector<32x32xf32>
    %253 = vector.shape_cast %239 : vector<16x32xf32> to vector<2x8x32xf32>
    %254 = vector.extract_strided_slice %253 {offsets = [0, 0, 0], sizes = [2, 8, 8], strides = [1, 1, 1]} : vector<2x8x32xf32> to vector<2x8x8xf32>
    %255 = vector.extract_strided_slice %253 {offsets = [0, 0, 8], sizes = [2, 8, 8], strides = [1, 1, 1]} : vector<2x8x32xf32> to vector<2x8x8xf32>
    %256 = vector.extract_strided_slice %253 {offsets = [0, 0, 16], sizes = [2, 8, 8], strides = [1, 1, 1]} : vector<2x8x32xf32> to vector<2x8x8xf32>
    %257 = vector.extract_strided_slice %253 {offsets = [0, 0, 24], sizes = [2, 8, 8], strides = [1, 1, 1]} : vector<2x8x32xf32> to vector<2x8x8xf32>
    %258 = vector.shape_cast %254 : vector<2x8x8xf32> to vector<1x2x8x8xf32>
    %259 = vector.shape_cast %255 : vector<2x8x8xf32> to vector<1x2x8x8xf32>
    %260 = vector.shape_cast %256 : vector<2x8x8xf32> to vector<1x2x8x8xf32>
    %261 = vector.shape_cast %257 : vector<2x8x8xf32> to vector<1x2x8x8xf32>
    %262 = tpu.concatenate %258, %259, %260, %261 in 0 : vector<1x2x8x8xf32>, vector<1x2x8x8xf32>, vector<1x2x8x8xf32>, vector<1x2x8x8xf32> -> vector<4x2x8x8xf32>
    %263 = vector.shape_cast %262 : vector<4x2x8x8xf32> to vector<8x8x8xf32>
    %264 = arith.truncf %263 : vector<8x8x8xf32> to vector<8x8x8xbf16>
    %265 = vector.shape_cast %246 : vector<32x32xf32> to vector<2x16x32xf32>
    %266 = vector.extract_strided_slice %265 {offsets = [0, 0, 0], sizes = [2, 16, 8], strides = [1, 1, 1]} : vector<2x16x32xf32> to vector<2x16x8xf32>
    %267 = vector.extract_strided_slice %265 {offsets = [0, 0, 8], sizes = [2, 16, 8], strides = [1, 1, 1]} : vector<2x16x32xf32> to vector<2x16x8xf32>
    %268 = vector.extract_strided_slice %265 {offsets = [0, 0, 16], sizes = [2, 16, 8], strides = [1, 1, 1]} : vector<2x16x32xf32> to vector<2x16x8xf32>
    %269 = vector.extract_strided_slice %265 {offsets = [0, 0, 24], sizes = [2, 16, 8], strides = [1, 1, 1]} : vector<2x16x32xf32> to vector<2x16x8xf32>
    %270 = vector.shape_cast %266 : vector<2x16x8xf32> to vector<1x2x16x8xf32>
    %271 = vector.shape_cast %267 : vector<2x16x8xf32> to vector<1x2x16x8xf32>
    %272 = vector.shape_cast %268 : vector<2x16x8xf32> to vector<1x2x16x8xf32>
    %273 = vector.shape_cast %269 : vector<2x16x8xf32> to vector<1x2x16x8xf32>
    %274 = tpu.concatenate %270, %271, %272, %273 in 0 : vector<1x2x16x8xf32>, vector<1x2x16x8xf32>, vector<1x2x16x8xf32>, vector<1x2x16x8xf32> -> vector<4x2x16x8xf32>
    %275 = vector.shape_cast %274 : vector<4x2x16x8xf32> to vector<8x16x8xf32>
    %276 = arith.truncf %275 : vector<8x16x8xf32> to vector<8x16x8xbf16>
    %277 = vector.shape_cast %252 : vector<32x32xf32> to vector<2x16x32xf32>
    %278 = vector.extract_strided_slice %277 {offsets = [0, 0, 0], sizes = [2, 16, 8], strides = [1, 1, 1]} : vector<2x16x32xf32> to vector<2x16x8xf32>
    %279 = vector.extract_strided_slice %277 {offsets = [0, 0, 8], sizes = [2, 16, 8], strides = [1, 1, 1]} : vector<2x16x32xf32> to vector<2x16x8xf32>
    %280 = vector.extract_strided_slice %277 {offsets = [0, 0, 16], sizes = [2, 16, 8], strides = [1, 1, 1]} : vector<2x16x32xf32> to vector<2x16x8xf32>
    %281 = vector.extract_strided_slice %277 {offsets = [0, 0, 24], sizes = [2, 16, 8], strides = [1, 1, 1]} : vector<2x16x32xf32> to vector<2x16x8xf32>
    %282 = vector.shape_cast %278 : vector<2x16x8xf32> to vector<1x2x16x8xf32>
    %283 = vector.shape_cast %279 : vector<2x16x8xf32> to vector<1x2x16x8xf32>
    %284 = vector.shape_cast %280 : vector<2x16x8xf32> to vector<1x2x16x8xf32>
    %285 = vector.shape_cast %281 : vector<2x16x8xf32> to vector<1x2x16x8xf32>
    %286 = tpu.concatenate %282, %283, %284, %285 in 0 : vector<1x2x16x8xf32>, vector<1x2x16x8xf32>, vector<1x2x16x8xf32>, vector<1x2x16x8xf32> -> vector<4x2x16x8xf32>
    %287 = vector.shape_cast %286 : vector<4x2x16x8xf32> to vector<8x16x8xf32>
    %288 = arith.truncf %287 : vector<8x16x8xf32> to vector<8x16x8xbf16>
    %c0_60 = arith.constant 0 : index
    %c0_61 = arith.constant 0 : index
    %c0_62 = arith.constant 0 : index
    %c0_63 = arith.constant 0 : index
    %289 = vector.load %arg5[%c0_60, %c0_61, %c0_62, %c0_63] : memref<4x2x1x16xf32, #tpu.memory_space<vmem>>, vector<4x2x1x16xf32>
    %290 = vector.shape_cast %289 : vector<4x2x1x16xf32> to vector<8x1x16xf32>
    "tpu.trace_start"() <{level = 10 : i32, message = "gtd,gld->gtl"}> : () -> ()
    %cst_64 = arith.constant dense<0.000000e+00> : vector<8x8x16xf32>
    %291 = tpu.matmul %264, %276, %cst_64 {dimension_numbers = #tpu.dot_dimension_numbers<[2], [2], [1], [1], [0, 0, 0, 1, 1, 1], [0], [0]>} : vector<8x8x8xbf16>, vector<8x16x8xbf16>, vector<8x8x16xf32> -> vector<8x8x16xf32>
    "tpu.trace_stop"() : () -> ()
    %cst_65 = arith.constant 0.353553385 : f32
    %292 = vector.broadcast %cst_65 : f32 to vector<8x8x16xf32>
    %293 = arith.mulf %291, %292 : vector<8x8x16xf32>
    %294 = vector.broadcast %290 : vector<8x1x16xf32> to vector<8x8x16xf32>
    %295 = arith.addf %293, %294 : vector<8x8x16xf32>
    %cst_66 = arith.constant dense<0xFF800000> : vector<8x8xf32>
    %296 = vector.multi_reduction <maximumf>, %295, %cst_66 [2] : vector<8x8x16xf32> to vector<8x8xf32>
    %297 = vector.shape_cast %296 : vector<8x8xf32> to vector<8x8x1xf32>
    %298 = vector.broadcast %297 : vector<8x8x1xf32> to vector<8x8x16xf32>
    %299 = arith.subf %295, %298 : vector<8x8x16xf32>
    %300 = math.exp %299 : vector<8x8x16xf32>
    %cst_67 = arith.constant dense<0.000000e+00> : vector<8x8xf32>
    %301 = vector.multi_reduction <add>, %300, %cst_67 [2] : vector<8x8x16xf32> to vector<8x8xf32>
    %302 = vector.shape_cast %301 : vector<8x8xf32> to vector<8x8x1xf32>
    %303 = tpu.reciprocal %302 {approx = true} : vector<8x8x1xf32> -> vector<8x8x1xf32>
    %304 = vector.broadcast %303 : vector<8x8x1xf32> to vector<8x8x16xf32>
    %305 = arith.mulf %300, %304 : vector<8x8x16xf32>
    %306 = arith.truncf %305 : vector<8x8x16xf32> to vector<8x8x16xbf16>
    "tpu.trace_start"() <{level = 10 : i32, message = "gtl,gld->gtd"}> : () -> ()
    %cst_68 = arith.constant dense<0.000000e+00> : vector<8x8x8xf32>
    %307 = tpu.matmul %306, %288, %cst_68 {dimension_numbers = #tpu.dot_dimension_numbers<[2], [1], [1], [2], [0, 0, 0, 1, 1, 2], [0], [0]>} : vector<8x8x16xbf16>, vector<8x16x8xbf16>, vector<8x8x8xf32> -> vector<8x8x8xf32>
    "tpu.trace_stop"() : () -> ()
    %308 = vector.shape_cast %307 : vector<8x8x8xf32> to vector<4x16x8xf32>
    %309 = arith.truncf %308 : vector<4x16x8xf32> to vector<4x16x8xbf16>
    %c0_69 = arith.constant 0 : index
    %c0_70 = arith.constant 0 : index
    %c0_71 = arith.constant 0 : index
    %c0_72 = arith.constant 0 : index
    %310 = vector.load %arg15[%c0_69, %c0_70, %c0_71, %c0_72] : memref<1x4x8x32xbf16, #tpu.memory_space<vmem>>, vector<1x4x8x32xbf16>
    %311 = vector.shape_cast %310 : vector<1x4x8x32xbf16> to vector<4x8x32xbf16>
    %cst_73 = arith.constant dense<0.000000e+00> : vector<4x16x32xf32>
    %312 = tpu.matmul %309, %311, %cst_73 {dimension_numbers = #tpu.dot_dimension_numbers<[2], [1], [1], [2], [0, 0, 0, 1, 1, 2], [0], [0]>} : vector<4x16x8xbf16>, vector<4x8x32xbf16>, vector<4x16x32xf32> -> vector<4x16x32xf32>
    %cst_74 = arith.constant dense<0.000000e+00> : vector<16x32xf32>
    %313 = vector.multi_reduction <add>, %312, %cst_74 [0] : vector<4x16x32xf32> to vector<16x32xf32>
    %314 = vector.extract_strided_slice %6 {offsets = [9, 0], sizes = [1, 32], strides = [1, 1]} : vector<10x32xf32> to vector<1x32xf32>
    %315 = vector.broadcast %314 : vector<1x32xf32> to vector<16x32xf32>
    %316 = arith.addf %313, %315 : vector<16x32xf32>
    %317 = arith.addf %208, %316 : vector<16x32xf32>
    %c0_75 = arith.constant 0 : index
    %c0_76 = arith.constant 0 : index
    %318 = vector.load %arg17[%c0_75, %c0_76] : memref<16x32xf32, #tpu.memory_space<vmem>>, vector<16x32xf32>
    tpu.vector_store %arg17[%c0_75, %c0_76], %317 {strides = array<i32>} : memref<16x32xf32, #tpu.memory_space<vmem>>, vector<16x32xf32>,
    %c1_i32_77 = arith.constant 1 : i32
    %319 = arith.cmpi eq, %arg1, %c1_i32_77 : i32
    %320 = arith.extui %319 : i1 to i32
    %c0_i32_78 = arith.constant 0 : i32
    %321 = arith.cmpi ne, %320, %c0_i32_78 : i32
    scf.if %321 {
      %c0_79 = arith.constant 0 : index
      %c0_80 = arith.constant 0 : index
      %322 = vector.load %arg16[%c0_79, %c0_80] : memref<16x32xf32, #tpu.memory_space<vmem>>, vector<16x32xf32>
      tpu.vector_store %arg16[%c0_79, %c0_80], %317 {strides = array<i32>} : memref<16x32xf32, #tpu.memory_space<vmem>>, vector<16x32xf32>,
    } else {
    }
    return
  }
  func.func @transform_0(%arg0: i32, %arg1: i32) -> (i32, i32) {
    %c0_i32 = arith.constant 0 : i32
    %c0_i32_0 = arith.constant 0 : i32
    return %arg0, %c0_i32 : i32, i32
  }
  func.func @transform_1(%arg0: i32, %arg1: i32) -> (i32, i32) {
    %c0_i32 = arith.constant 0 : i32
    %c0_i32_0 = arith.constant 0 : i32
    return %arg0, %c0_i32 : i32, i32
  }
  func.func @transform_2(%arg0: i32, %arg1: i32) -> (i32, i32) {
    %c0_i32 = arith.constant 0 : i32
    %c0_i32_0 = arith.constant 0 : i32
    return %arg0, %c0_i32 : i32, i32
  }
  func.func @transform_3(%arg0: i32, %arg1: i32) -> (i32, i32, i32, i32) {
    %c0_i32 = arith.constant 0 : i32
    %c0_i32_0 = arith.constant 0 : i32
    %c0_i32_1 = arith.constant 0 : i32
    %c0_i32_2 = arith.constant 0 : i32
    return %c0_i32, %arg0, %c0_i32_0, %c0_i32_1 : i32, i32, i32, i32
  }
  func.func @transform_4(%arg0: i32, %arg1: i32) -> (i32, i32, i32) {
    %c0_i32 = arith.constant 0 : i32
    %c0_i32_0 = arith.constant 0 : i32
    %c0_i32_1 = arith.constant 0 : i32
    return %c0_i32, %arg0, %c0_i32_0 : i32, i32, i32
  }
  func.func @transform_5(%arg0: i32, %arg1: i32) -> (i32, i32, i32) {
    %c0_i32 = arith.constant 0 : i32
    %c0_i32_0 = arith.constant 0 : i32
    %c0_i32_1 = arith.constant 0 : i32
    return %arg1, %c0_i32, %c0_i32_0 : i32, i32, i32
  }
  func.func @transform_6(%arg0: i32, %arg1: i32) -> (i32, i32, i32) {
    %c0_i32 = arith.constant 0 : i32
    %c0_i32_0 = arith.constant 0 : i32
    %c0_i32_1 = arith.constant 0 : i32
    return %arg1, %c0_i32, %c0_i32_0 : i32, i32, i32
  }
  func.func @transform_7(%arg0: i32, %arg1: i32) -> (i32, i32, i32) {
    %c0_i32 = arith.constant 0 : i32
    %c0_i32_0 = arith.constant 0 : i32
    %c0_i32_1 = arith.constant 0 : i32
    return %arg1, %c0_i32, %c0_i32_0 : i32, i32, i32
  }
  func.func @transform_8(%arg0: i32, %arg1: i32) -> (i32, i32, i32) {
    %c0_i32 = arith.constant 0 : i32
    %c0_i32_0 = arith.constant 0 : i32
    %c0_i32_1 = arith.constant 0 : i32
    return %arg1, %c0_i32, %c0_i32_0 : i32, i32, i32
  }
  func.func @transform_9(%arg0: i32, %arg1: i32) -> (i32, i32, i32, i32) {
    %c0_i32 = arith.constant 0 : i32
    %c0_i32_0 = arith.constant 0 : i32
    %c0_i32_1 = arith.constant 0 : i32
    %c0_i32_2 = arith.constant 0 : i32
    return %arg1, %c0_i32, %c0_i32_0, %c0_i32_1 : i32, i32, i32, i32
  }
  func.func @transform_10(%arg0: i32, %arg1: i32) -> (i32, i32, i32) {
    %c0_i32 = arith.constant 0 : i32
    %c0_i32_0 = arith.constant 0 : i32
    %c0_i32_1 = arith.constant 0 : i32
    return %arg1, %c0_i32, %c0_i32_0 : i32, i32, i32
  }
  func.func @transform_11(%arg0: i32, %arg1: i32) -> (i32, i32, i32) {
    %c0_i32 = arith.constant 0 : i32
    %c0_i32_0 = arith.constant 0 : i32
    %c0_i32_1 = arith.constant 0 : i32
    return %arg1, %c0_i32, %c0_i32_0 : i32, i32, i32
  }
  func.func @transform_12(%arg0: i32, %arg1: i32) -> (i32, i32, i32) {
    %c0_i32 = arith.constant 0 : i32
    %c0_i32_0 = arith.constant 0 : i32
    %c0_i32_1 = arith.constant 0 : i32
    return %arg1, %c0_i32, %c0_i32_0 : i32, i32, i32
  }
  func.func @transform_13(%arg0: i32, %arg1: i32) -> (i32, i32, i32, i32) {
    %c0_i32 = arith.constant 0 : i32
    %c0_i32_0 = arith.constant 0 : i32
    %c0_i32_1 = arith.constant 0 : i32
    %c0_i32_2 = arith.constant 0 : i32
    return %arg1, %c0_i32, %c0_i32_0, %c0_i32_1 : i32, i32, i32, i32
  }
  func.func @transform_14(%arg0: i32, %arg1: i32) -> (i32, i32) {
    %c0_i32 = arith.constant 0 : i32
    %c0_i32_0 = arith.constant 0 : i32
    return %arg0, %c0_i32 : i32, i32
  }
}

</mosaic_0001>

<bundles_post_ra>
// kernel: tpu_custom_call.1
= control target key start
LH: loop header
LB: loop body
LE: loop exit
PB: predicated region body
PF: predicated region fallthrough
CT: control target
= control target key end

     0   :  { %s4344_s0 = inlined_call_operand.vmem [shape: f32[16,32], index: 0, kind: input, shape index: {}]   ;;  %s4345_s1 = inlined_call_operand.vmem [shape: f32[16,1], index: 1, kind: input, shape index: {}]   ;;  %s4346_s2 = inlined_call_operand.vmem [shape: bf16[32,32], index: 2, kind: input, shape index: {}]   ;;  %s4347_s3 = inlined_call_operand.vmem [shape: f32[4,2,1,16], index: 3, kind: input, shape index: {}]   ;;  %s4348_s4 = inlined_call_operand.vmem [shape: f32[11,16,1], index: 4, kind: input, shape index: {}]   ;;  %s4349_s5 = inlined_call_operand.vmem [shape: f32[2,10,32], index: 5, kind: input, shape index: {}]   ;;  %s4350_s6 = inlined_call_operand.vmem [shape: f32[2,3,64], index: 6, kind: input, shape index: {}]   ;;  %s4351_s7 = inlined_call_operand.vmem [shape: bf16[2,32,64], index: 7, kind: input, shape index: {}]   ;;  %s4352_s8 = inlined_call_operand.vmem [shape: bf16[2,64,32], index: 8, kind: input, shape index: {}]   ;;  %s4353_s9 = inlined_call_operand.vmem [shape: f32[2,11,1,32], index: 9, kind: input, shape index: {}]   ;;  %s4354_s10 = inlined_call_operand.vmem [shape: bf16[2,32,32], index: 10, kind: input, shape index: {}]   ;;  %s4355_s11 = inlined_call_operand.vmem [shape: bf16[2,32,32], index: 11, kind: input, shape index: {}]   ;;  %s4356_s12 = inlined_call_operand.vmem [shape: bf16[2,32,32], index: 12, kind: input, shape index: {}]   ;;  %s4357_s13 = inlined_call_operand.vmem [shape: bf16[2,4,8,32], index: 13, kind: input, shape index: {}]   ;;  %s4358_s14 = inlined_call_operand.hbm [shape: f32[16,32], index: 14, kind: output, shape index: {}]  }
   0x1   :  { %4363 = sst [smem:[#allocation9_spill]] %s4347_s3 }
   0x2   :  { %4364 = sst [smem:[#allocation10_spill]] %s4349_s5 }
   0x3   :  { %4365 = sst [smem:[#allocation11_spill]] %s4350_s6 }
   0x4   :  { %4366 = sst [smem:[#allocation12_spill]] %s4351_s7 }
   0x5   :  { %4367 = sst [smem:[#allocation13_spill]] %s4358_s14 }
   0x6   :  { %19 = vsyncpa [#allocation4], 0  ;;  %s3689_s29 = smov 0   ;;  %s3691_s30 = smov 0  }
   0x7   :  { %s3693_s15 = smov 0  }
   0x8 LB: > { %4368 = sst [smem:[#allocation6_spill]] %s3599_s30  ;;  %s34_s17 = sadd.s32 1, %s3599_s30  ;;  %s3603_s15 = sphi %s3693_s15, %s25_s15   ;;  %s3599_s30 = sphi %s3691_s30, %s4381_s30   ;;  %s3595_s29 = sphi %s3689_s29, %s4380_s29  }
   0x9   : > { %4369 = sst [smem:[#allocation7_spill]] %s3603_s15  ;;  %p35_p0 = scmp.ge.s32.totalorder %s34_s17, 2 }
   0xa   : > { %p3060_p1 = scmp.ge.s32.totalorder %s3603_s15, 1  ;;  %p557_p2 = scmp.lt.s32.totalorder %s3603_s15, 3 }
   0xb   : > { %s4383_s17 = smov (%p35_p0, %s34_s17), 0 }
   0xc   : > { %4370 = sst [smem:[#allocation8_spill]] %s4383_s17  ;;  %p558_p3 = pnand %p3060_p1, %p557_p2 }
   0xd   : > { %p689_p4 = scmp.lt.s32.totalorder (!%p558_p3), %s3595_s29, 1  ;;  %s4371_s5 = sld [smem:[#allocation10_spill]] (!%p558_p3) }
   0xe   : > { %561 = sbr.rel (%p558_p3) target bundleno = 3192 (0xc78), region = 76  ;;  %s4372_s6 = sld [smem:[#allocation11_spill]] (!%p558_p3) }
   0xf   : > { %s4373_s7 = sld [smem:[#allocation12_spill]] (!%p558_p3)  ;;  %p3076_p5 = scmp.ne.s32.totalorder (!%p558_p3), %s3595_s29, 0 }
  0x15   : > { %s690_s18 = scalar_select %p689_p4, %s3595_s29, 1 }
  0x16   : > { %v738_v0 = vld [vmem:[%s4344_s0] sm:$0xff] (!%p3076_p5)  ;;  %vm740_vm0 = vcmask (!%p3076_p5), 261120   ;;  %v739_v1 = vld [vmem:[%s4344_s0 + $0x8] sm:$0xff] (!%p3076_p5) }
  0x17   : > { %s3142_s19 = sshll.u32 %s690_s18, 4  ;;  %s3063_s20 = sshll.u32 %s690_s18, 2  ;;  %741 = vst.msk [vmem:[#allocation2] sm:$0xff] (!%p3076_p5), %vm740_vm0, %v738_v0  ;;  %742 = vst.msk [vmem:[#allocation2 + $0x8] sm:$0xff] (!%p3076_p5), %vm740_vm0, %v739_v1 }
  0x18   : > { %s3715_s23 = scalar_lea.vmem %s4371_s5, %s3142_s19  ;;  %s3720_s26 = scalar_lea.vmem %s4372_s6, %s3063_s20 }
  0x19   : > { %s3725_s16 = scalar_lea.vmem %s4373_s7, %s3142_s19  ;;  %s3144_s17 = sshll.u32 %s690_s18, 5 }
  0x1a   : > { %s3730_s15 = scalar_lea.vmem %s4352_s8, %s3144_s17  ;;  %s3372_s3 = smul.u32 11, %s690_s18 }
  0x1b   : > { %s3735_s5 = scalar_lea.vmem %s4354_s10, %s3142_s19  ;;  %s3740_s25 = scalar_lea.vmem %s4355_s11, %s3142_s19 }
  0x1c   : > { %s3745_s6 = scalar_lea.vmem %s4353_s9, %s3372_s3  ;;  %s3750_s30 = scalar_lea.vmem %s4356_s12, %s3142_s19 }
  0x1d   : > { %s3755_s21 = scalar_lea.vmem %s4357_s13, %s3142_s19  ;;  %737 = sbr.rel (%p3076_p5) target bundleno = 36 (0x24), region = 80 }
  0x24 PF: > { %v3764_v2 = vld [vmem:[#allocation2] sm:$0xff]  ;;  %vm750_vm1 = vcmask 261120   ;;  %v3766_v3 = vld [vmem:[#allocation2 + $0x8] sm:$0xff]  ;;  %v3605_v17 = vmov 0.0   ;;  %vm3606_vm2 = vmmov 0   ;;  %v778_v23 = vlaneseq  ;;  %v3493_v1 = vld [vmem:[%s3730_s15 + $0x10] sm:$0xff]  }
  0x25   : > { %v751_v4 = vsel %vm750_vm1, %v3764_v2, 0.0  ;;  %v754_v5 = vsel %vm750_vm1, %v3766_v3, 0.0  ;;  %v3489_v16 = vld [vmem:[%s3725_s16] sm:$0xff]   ;;  %3208 = vmatprep.subr.bf16.mxu0 %v3605_v17  ;;  %3216 = vmatprep.subr.bf16.mxu1 %v3605_v17  ;;  %v3490_v18 = vld [vmem:[%s3725_s16 + $0x8] sm:$0xff]   ;;  %vm857_vm3 = vcmask 523264   ;;  %vm1721_vm11 = vcmask 64512  }
  0x26   : > { %752 = vadd.xlane.f32.xlu0 %v751_v4  ;;  %3209 = vmatpush3.bf16.msra.mxu0 %v3489_v16  ;;  %v3786_v26 = vshrl.u32 %v778_v23, 7  ;;  %v3792_v28 = vld [vmem:[%s3715_s23] sm:$0xff]  ;;  %v3492_v0 = vld [vmem:[%s3730_s15 + $0x8] sm:$0xff]   ;;  %v3494_v4 = vld [vmem:[%s3730_s15 + $0x18] sm:$0xff]   ;;  %s4374_s28 = sld [smem:[#allocation9_spill]]  ;;  %vm2154_vm12 = vcmask 130048  }
  0x27   : > { %3212 = vmatprep.mubr.msk.bf16.mxu0 %vm3606_vm2, %v3605_v17  ;;  %3210 = vmatprep.subr.bf16.mxu0 %v3605_v17  ;;  %v749_v41 = vld [vmem:[%s3720_s26] sm:$0x7]  ;;  %s3610_s26 = smov 104   ;;  %vm2606_vm13 = vcmask 1043456   ;;  %p3137_p6 = scmp.ne.s32.totalorder %s3595_s29, 1 }
  0x28   : > { %3224 = vmatprep.mubr.msk.bf16.mxu1 %vm3606_vm2, %v3605_v17  ;;  %v3789_v27 = vsub.s32 0, %v3786_v26  ;;  %v3797_v32 = vsub.s32 1, %v3786_v26  ;;  %v3491_v63 = vld [vmem:[%s3730_s15] sm:$0xff]   ;;  %vm1059_vm4 = vcmp.lt.s32.totalorder %v3786_v26, 5  ;;  %vm1086_vm5 = vcmp.lt.s32.totalorder %v3786_v26, 4 }
  0x29   : > { %3217 = vmatpush3.bf16.msra.mxu1 %v3491_v63  ;;  %v1051_v63 = vld [vmem:[%s4348_s4 + $0x90] sm:$0xff]  ;;  %vm1113_vm6 = vcmp.lt.s32.totalorder %v3786_v26, 3  ;;  %vm1167_vm7 = vcmp.lt.s32.totalorder %v3786_v26, 1  ;;  %vm1204_vm8 = vcmp.lt.s32.totalorder %v3786_v26, 7  ;;  %vm1140_vm9 = vcmp.lt.s32.totalorder %v3786_v26, 2 }
  0x2a   : > { %755 = vadd.xlane.f32.xlu0 %v754_v5  ;;  %3211 = vmatpush3.bf16.msra.mxu0 %v3490_v18  ;;  %v781_v31 = vrot.slane %v3792_v28, %v3789_v27  ;;  %v787_v36 = vrot.slane %v3792_v28, %v3797_v32  ;;  %v798_v42 = vrot.slane %v749_v41, %v3789_v27  ;;  %v746_v5 = vld [vmem:[%s4345_s1 + $0x8] sm:$0xff]  ;;  %vm1231_vm10 = vcmp.lt.s32.totalorder %v3786_v26, 6 }
  0x2b   : > { %3228 = vmatprep.subr.bf16.mxu0 %v3605_v17  ;;  %3218 = vmatprep.subr.bf16.mxu1 %v3605_v17 }
  0x2d   : > { %3219 = vmatpush3.bf16.msra.mxu1 %v3492_v0  ;;  %v1050_v0 = vld [vmem:[%s4348_s4 + $0x88] sm:$0xff] }
  0x2e   : > { %3220 = vmatprep.subr.bf16.mxu1 %v3605_v17 }
  0x31   : > { %3221 = vmatpush3.bf16.msra.mxu1 %v3493_v1  ;;  %v1053_v1 = vld [vmem:[%s4348_s4 + $0xa0] sm:$0xff] }
  0x32   : > { %3222 = vmatprep.subr.bf16.mxu1 %v3605_v17 }
  0x35   : > { %3223 = vmatpush3.bf16.msra.mxu1 %v3494_v4  ;;  %v1052_v4 = vld [vmem:[%s4348_s4 + $0x98] sm:$0xff] }
  0xb3   : > { %v753_v6 = vpop.xlane.xlu0 %752 }
  0xb4   : > { %v758_v7 = vmul.f32 0.03125, %v753_v6  ;;  %v3607_v6 = vmov 0  }
  0xb5   : > { %3413 = vset.pattern.permute.xlu1 %v3607_v6  ;;  %3412 = vset.pattern.permute.xlu0 %v3607_v6 }
  0xb6   : > { %v760_v8 = vsub.f32 %v3764_v2, %v758_v7 }
  0xb7   : > { %v756_v9 = vpop.xlane.xlu0 %755 }
  0xb8   : > { %v759_v10 = vmul.f32 0.03125, %v756_v9  ;;  %v762_v11 = vmul.f32 %v760_v8, %v760_v8 }
  0xba   : > { %v761_v12 = vsub.f32 %v3766_v3, %v759_v10  ;;  %v764_v13 = vsel %vm750_vm1, %v762_v11, 0.0 }
  0xbb   : > { %765 = vadd.xlane.f32.xlu1 %v764_v13  ;;  %v888_v13 = vrot.slane %v749_v41, %v3797_v32 }
  0xbc   : > { %v763_v14 = vmul.f32 %v761_v12, %v761_v12 }
  0xbe   : > { %v767_v15 = vsel %vm750_vm1, %v763_v14, 0.0  ;;  %v893_v14 = vsub.s32 2, %v3786_v26 }
  0xbf   : > { %768 = vadd.xlane.f32.xlu1 %v767_v15 }
 0x148   : > { %v766_v19 = vpop.xlane.xlu1 %765 }
 0x149   : > { %v770_v20 = vmul.f32 0.03125, %v766_v19  ;;  %v894_v19 = vrot.slane %v749_v41, %v893_v14  ;;  %v1038_v41 = vld [vmem:[%s4348_s4 + $0x18] sm:$0xff] }
 0x14b   : > { %v772_v21 = vadd.f32 1e-12, %v770_v20 }
 0x14c   : > { %v769_v22 = vpop.xlane.xlu1 %768 }
 0x14d   : > { %3503 = vrsqrt.f32 %v772_v21  ;;  %v771_v24 = vmul.f32 0.03125, %v769_v22 }
 0x14f   : > { %v773_v25 = vadd.f32 1e-12, %v771_v24 }
 0x151   : > { %3505 = vrsqrt.f32 %v773_v25 }
 0x157   : > { %v3504_v29 = vpop.eup %3503 }
 0x158   : > { %v776_v30 = vmul.f32 %v3504_v29, %v760_v8 }
 0x15a   : > { %v782_v35 = vmul.f32 %v781_v31, %v776_v30 }
 0x15b   : > { %v3506_v33 = vpop.eup %3505 }
 0x15c   : > { %v777_v34 = vmul.f32 %v3506_v33, %v761_v12  ;;  %v788_v38 = vadd.f32 %v787_v36, %v782_v35 }
 0x15e   : > { %v783_v37 = vmul.f32 %v781_v31, %v777_v34 }
 0x160   : > { %v789_v39 = vadd.f32 %v787_v36, %v783_v37  ;;  %v1035_v36 = vld [vmem:[%s4348_s4] sm:$0xff] }
 0x161   : > { %v745_v37 = vld [vmem:[%s4345_s1] sm:$0xff] }
 0x162   : > { %v794_v40 = vpack.c.bf16 %v789_v39, %v788_v38  ;;  %v1036_v38 = vld [vmem:[%s4348_s4 + $0x8] sm:$0xff]  ;;  %v1042_v39 = vld [vmem:[%s4348_s4 + $0x38] sm:$0xff] }
 0x164   : > { %3213 = vmatmul.mubr.msk.bf16.vlgmr.msra.gmra.mrb[0].mxu0 %vm750_vm1, %v794_v40  ;;  %v1037_v40 = vld [vmem:[%s4348_s4 + $0x10] sm:$0xff] }
 0x165   : > { %3232 = vmatprep.mubr.msk.bf16.mxu0 %vm3606_vm2, %v3605_v17 }
 0x237   : > { %v848_v43 = vpop.f32.mrb[0].mxu0 }
 0x238   : > { %v849_v44 = vadd.f32 %v848_v43, %v798_v42  ;;  %v3214_v45 = vpop.f32.mrb[1].mxu0  ;;  %v1040_v43 = vld [vmem:[%s4348_s4 + $0x28] sm:$0xff] }
 0x239   : > { %v851_v46 = vpop.f32.mrb[2].mxu0  ;;  %v1043_v45 = vld [vmem:[%s4348_s4 + $0x40] sm:$0xff] }
 0x23a   : > { %v855_v47 = vmax.f32 %v849_v44, 0.0  ;;  %v852_v48 = vadd.f32 %v851_v46, %v798_v42  ;;  %v3215_v49 = vpop.f32.mrb[3].mxu0  ;;  %v1039_v42 = vld [vmem:[%s4348_s4 + $0x20] sm:$0xff]  ;;  %v1041_v44 = vld [vmem:[%s4348_s4 + $0x30] sm:$0xff] }
 0x23c   : > { %v856_v50 = vmax.f32 %v852_v48, 0.0  ;;  %v858_v51 = vsel %vm857_vm3, %v855_v47, 0.0 }
 0x23d   : > { %859 = vadd.xlane.f32.xlu0 %v858_v51 }
 0x23e   : > { %v861_v52 = vsel %vm857_vm3, %v856_v50, 0.0 }
 0x23f   : > { %862 = vadd.xlane.f32.xlu1 %v861_v52 }
 0x2ca   : > { %v860_v53 = vpop.xlane.xlu0 %859 }
 0x2cb   : > { %v865_v54 = vmul.f32 0.015625, %v860_v53 }
 0x2cc   : > { %v863_v55 = vpop.xlane.xlu1 %862 }
 0x2cd   : > { %v867_v56 = vsub.f32 %v855_v47, %v865_v54  ;;  %v866_v57 = vmul.f32 0.015625, %v863_v55 }
 0x2cf   : > { %v868_v58 = vsub.f32 %v856_v50, %v866_v57  ;;  %v869_v59 = vmul.f32 %v867_v56, %v867_v56  ;;  %v1045_v57 = vld [vmem:[%s4348_s4 + $0x60] sm:$0xff] }
 0x2d1   : > { %v871_v60 = vsel %vm857_vm3, %v869_v59, 0.0  ;;  %v870_v61 = vmul.f32 %v868_v58, %v868_v58  ;;  %v1047_v59 = vld [vmem:[%s4348_s4 + $0x70] sm:$0xff] }
 0x2d2   : > { %872 = vadd.xlane.f32.xlu0 %v871_v60  ;;  %v1046_v60 = vld [vmem:[%s4348_s4 + $0x68] sm:$0xff] }
 0x2d3   : > { %v874_v62 = vsel %vm857_vm3, %v870_v61, 0.0  ;;  %v1049_v61 = vld [vmem:[%s4348_s4 + $0x80] sm:$0xff] }
 0x2d4   : > { %875 = vadd.xlane.f32.xlu1 %v874_v62  ;;  %v1048_v62 = vld [vmem:[%s4348_s4 + $0x78] sm:$0xff] }
 0x2e5   : > { %1019 = vperm.xlu1 %3413, %v746_v5   ;;  %v1054_v5 = vld [vmem:[%s4348_s4 + $0xa8] sm:$0xff] }
 0x35f   : > { %v873_v7 = vpop.xlane.xlu0 %872 }
 0x360   : > { %v877_v8 = vmul.f32 0.015625, %v873_v7 }
 0x361   : > { %v876_v9 = vpop.xlane.xlu1 %875 }
 0x362   : > { %v879_v10 = vadd.f32 1e-12, %v877_v8  ;;  %v878_v11 = vmul.f32 0.015625, %v876_v9 }
 0x364   : > { %3507 = vrsqrt.f32 %v879_v10  ;;  %v880_v12 = vadd.f32 1e-12, %v878_v11 }
 0x365   : > { %v3857_v46 = vpop.permute.xlu1 %1019 }
 0x366   : > { %3509 = vrsqrt.f32 %v880_v12 }
 0x36e   : > { %v3508_v15 = vpop.eup %3507 }
 0x36f   : > { %v883_v16 = vmul.f32 %v3508_v15, %v867_v56 }
 0x370   : > { %v3510_v18 = vpop.eup %3509 }
 0x371   : > { %v884_v20 = vmul.f32 %v3510_v18, %v868_v58  ;;  %v889_v21 = vmul.f32 %v888_v13, %v883_v16  ;;  %v1044_v58 = vld [vmem:[%s4348_s4 + $0x48] sm:$0xff] }
 0x373   : > { %v890_v22 = vmul.f32 %v888_v13, %v884_v20  ;;  %v895_v23 = vadd.f32 %v894_v19, %v889_v21 }
 0x375   : > { %v896_v24 = vadd.f32 %v894_v19, %v890_v22 }
 0x377   : > { %v905_v25 = vpack.c.bf16 %v896_v24, %v895_v23  ;;  %v1008_v24 = vsub.s32 3, %v3786_v26 }
 0x379   : > { %3225 = vmatmul.mubr.msk.bf16.vlgmr.msra.gmra.mrb[0].mxu1 %vm857_vm3, %v905_v25  ;;  %v1003_v25 = vrot.slane %v3792_v28, %v893_v14 }
 0x44c   : > { %v967_v29 = vpop.f32.mrb[0].mxu1 }
 0x44d   : > { %v3226_v30 = vpop.f32.mrb[1].mxu1  ;;  %v974_v31 = vsel %vm750_vm1, %v967_v29, 0.0 }
 0x44e   : > { %975 = vadd.xlane.f32.xlu0 %v974_v31  ;;  %v970_v33 = vpop.f32.mrb[2].mxu1  ;;  %v1009_v30 = vrot.slane %v3792_v28, %v1008_v24 }
 0x44f   : > { %v3227_v34 = vpop.f32.mrb[3].mxu1  ;;  %v977_v35 = vsel %vm750_vm1, %v970_v33, 0.0 }
 0x450   : > { %978 = vadd.xlane.f32.xlu1 %v977_v35 }
 0x461   : > { %1064 = vperm.xlu1 %3413, %v1035_v36  }
 0x464   : > { %1014 = vperm.xlu0 %3412, %v745_v37  }
 0x465   : > { %1069 = vperm.xlu1 %3413, %v1036_v38  }
 0x468   : > { %1150 = vperm.xlu0 %3412, %v1042_v39  }
 0x469   : > { %1091 = vperm.xlu1 %3413, %v1037_v40  }
 0x46d   : > { %1096 = vperm.xlu1 %3413, %v1038_v41  }
 0x471   : > { %1118 = vperm.xlu1 %3413, %v1039_v42  }
 0x475   : > { %1123 = vperm.xlu1 %3413, %v1040_v43  }
 0x479   : > { %1145 = vperm.xlu1 %3413, %v1041_v44  }
 0x47d   : > { %1172 = vperm.xlu1 %3413, %v1043_v45  }
 0x4db   : > { %v976_v47 = vpop.xlane.xlu0 %975 }
 0x4dc   : > { %v980_v48 = vmul.f32 0.03125, %v976_v47 }
 0x4dd   : > { %v979_v49 = vpop.xlane.xlu1 %978 }
 0x4de   : > { %v982_v50 = vsub.f32 %v967_v29, %v980_v48  ;;  %v981_v51 = vmul.f32 0.03125, %v979_v49 }
 0x4e0   : > { %v983_v52 = vsub.f32 %v970_v33, %v981_v51  ;;  %v984_v53 = vmul.f32 %v982_v50, %v982_v50 }
 0x4e1   : > { %v3894_v6 = vpop.permute.xlu1 %1064 }
 0x4e2   : > { %v986_v54 = vsel %vm750_vm1, %v984_v53, 0.0  ;;  %v985_v55 = vmul.f32 %v983_v52, %v983_v52  ;;  %v3085_v53 = vld [vmem:[%s3745_s6] ss:$0 sm:$0xff] }
 0x4e3   : > { %987 = vadd.xlane.f32.xlu0 %v986_v54  ;;  %v3902_v12 = vpop.permute.xlu0 %1014 }
 0x4e4   : > { %v989_v56 = vsel %vm750_vm1, %v985_v55, 0.0 }
 0x4e5   : > { %990 = vadd.xlane.f32.xlu1 %v989_v56  ;;  %v1070_v7 = vpop.permute.xlu1 %1069 }
 0x4e7   : > { %v3906_v15 = vpop.permute.xlu0 %1150 }
 0x4e9   : > { %v3896_v8 = vpop.permute.xlu1 %1091 }
 0x4ed   : > { %v1097_v9 = vpop.permute.xlu1 %1096 }
 0x4f1   : > { %v3898_v10 = vpop.permute.xlu1 %1118 }
 0x4f5   : > { %v3900_v11 = vpop.permute.xlu1 %1123 }
 0x4f6   : > { %1209 = vperm.xlu1 %3413, %v1045_v57   ;;  %v3086_v57 = vld [vmem:[%s3745_s6 + $0x1] ss:$0 sm:$0xff] }
 0x4f9   : > { %1177 = vperm.xlu0 %3412, %v1044_v58   ;;  %v3904_v13 = vpop.permute.xlu1 %1145 }
 0x4fa   : > { %1236 = vperm.xlu1 %3413, %v1047_v59  }
 0x4fd   : > { %1214 = vperm.xlu0 %3412, %v1046_v60   ;;  %v3908_v16 = vpop.permute.xlu1 %1172 }
 0x4fe   : > { %1258 = vperm.xlu1 %3413, %v1049_v61  }
 0x501   : > { %1241 = vperm.xlu0 %3412, %v1048_v62  }
 0x502   : > { %1280 = vperm.xlu1 %3413, %v1051_v63  }
 0x505   : > { %1263 = vperm.xlu0 %3412, %v1050_v0  }
 0x506   : > { %1302 = vperm.xlu1 %3413, %v1053_v1  }
 0x509   : > { %1285 = vperm.xlu0 %3412, %v1052_v4  }
 0x50d   : > { %1307 = vperm.xlu0 %3412, %v1054_v5  }
 0x570   : > { %v988_v18 = vpop.xlane.xlu0 %987 }
 0x571   : > { %v992_v19 = vmul.f32 0.03125, %v988_v18 }
 0x572   : > { %v991_v20 = vpop.xlane.xlu1 %990 }
 0x573   : > { %v994_v21 = vadd.f32 1e-12, %v992_v19  ;;  %v993_v22 = vmul.f32 0.03125, %v991_v20  ;;  %v3087_v19 = vld [vmem:[%s3745_s6 + $0x2] ss:$0 sm:$0xff] }
 0x575   : > { %3511 = vrsqrt.f32 %v994_v21  ;;  %v995_v23 = vadd.f32 1e-12, %v993_v22 }
 0x576   : > { %v3929_v47 = vpop.permute.xlu1 %1209 }
 0x577   : > { %3513 = vrsqrt.f32 %v995_v23 }
 0x578   : > { %v1178_v34 = vpop.permute.xlu0 %1177 }
 0x57a   : > { %v1237_v5 = vpop.permute.xlu1 %1236 }
 0x57c   : > { %v3915_v40 = vpop.permute.xlu0 %1214 }
 0x57f   : > { %v3512_v29 = vpop.eup %3511 }
 0x580   : > { %v998_v31 = vmul.f32 %v3512_v29, %v982_v50  ;;  %v3931_v48 = vpop.permute.xlu0 %1241 }
 0x581   : > { %v3514_v33 = vpop.eup %3513 }
 0x582   : > { %v1004_v35 = vmul.f32 %v1003_v25, %v998_v31  ;;  %v999_v36 = vmul.f32 %v3514_v33, %v983_v52 }
 0x584   : > { %v1010_v37 = vadd.f32 %v1009_v30, %v1004_v35  ;;  %v1005_v38 = vmul.f32 %v1003_v25, %v999_v36 }
 0x586   : > { %v1011_v39 = vadd.f32 %v1009_v30, %v1005_v38  ;;  %v3918_v41 = vmul.f32 %v3902_v12, %v1010_v37  ;;  %v3088_v30 = vld [vmem:[%s3745_s6 + $0x3] ss:$0 sm:$0xff] }
 0x588   : > { %v3921_v42 = vmul.f32 %v3857_v46, %v1011_v39  ;;  %v1055_v44 = vrot.slane %v3918_v41, 3  ;;  %v1084_v45 = vrot.slane %v3918_v41, 4  ;;  %v1111_v54 = vrot.slane %v3918_v41, 5 }
 0x589   : > { %v1165_v55 = vrot.slane %v3918_v41, 7  ;;  %v1138_v0 = vrot.slane %v3918_v41, 6  ;;  %v1202_v20 = vrot.slane %v3918_v41, 1  ;;  %v1229_v25 = vrot.slane %v3918_v41, 2 }
 0x58a   : > { %v1056_v14 = vrot.slane %v3921_v42, 3  ;;  %v1085_v43 = vrot.slane %v3921_v42, 4  ;;  %v1112_v49 = vrot.slane %v3921_v42, 5  ;;  %v1166_v50 = vrot.slane %v3921_v42, 7 }
 0x58b   : > { %v1139_v58 = vrot.slane %v3921_v42, 6  ;;  %v1203_v1 = vrot.slane %v3921_v42, 1  ;;  %v1230_v4 = vrot.slane %v3921_v42, 2 }
 0x58c   : > { %v3937_v51 = vsel %vm1059_vm4, %v1055_v44, %v1056_v14  ;;  %v3941_v52 = vsel %vm1086_vm5, %v1084_v45, %v1085_v43  ;;  %v1061_v60 = vsel %vm1059_vm4, %v1056_v14, %v1055_v44  ;;  %v3957_v61 = vsel %vm1113_vm6, %v1111_v54, %v1112_v49 }
 0x58d   : > { %v1073_v56 = vmul.f32 %v1070_v7, %v3937_v51  ;;  %v1100_v59 = vmul.f32 %v1097_v9, %v3941_v52  ;;  %v1168_v62 = vsel %vm1167_vm7, %v1165_v55, %v1166_v50  ;;  %v1264_v9 = vpop.permute.xlu0 %1263  ;;  %v1072_v18 = vmul.f32 %v3894_v6, %v1061_v60  ;;  %v3089_v6 = vld [vmem:[%s3745_s6 + $0x4] ss:$0 sm:$0xff] }
 0x58e   : > { %v1127_v21 = vmul.f32 %v3900_v11, %v3957_v61  ;;  %v1141_v22 = vsel %vm1140_vm9, %v1138_v0, %v1139_v58  ;;  %v1088_v23 = vsel %vm1086_vm5, %v1085_v43, %v1084_v45  ;;  %v1181_v24 = vmul.f32 %v1178_v34, %v1168_v62 }
 0x58f   : > { %v1081_v63 = vmul.f32 %v3085_v53, %v1073_v56  ;;  %v1108_v7 = vmul.f32 %v3086_v57, %v1100_v59  ;;  %v1154_v31 = vmul.f32 %v3906_v15, %v1141_v22  ;;  %v1169_v33 = vsel %vm1167_vm7, %v1166_v50, %v1165_v55 }
 0x590   : > { %v1080_v35 = vmul.f32 %v3085_v53, %v1072_v18  ;;  %v1135_v36 = vmul.f32 %v3087_v19, %v1127_v21  ;;  %v1099_v11 = vmul.f32 %v3896_v8, %v1088_v23  ;;  %v1206_v37 = vsel %vm1204_vm8, %v1203_v1, %v1202_v20  ;;  %v1259_v53 = vpop.permute.xlu1 %1258 }
 0x591   : > { %v1110_v29 = vadd.f32 %v1108_v7, %v1081_v63  ;;  %v1233_v34 = vsel %vm1231_vm10, %v1230_v4, %v1229_v25  ;;  %v1115_v38 = vsel %vm1113_vm6, %v1112_v49, %v1111_v54  ;;  %v1142_v15 = vsel %vm1140_vm9, %v1139_v58, %v1138_v0  ;;  %v1286_v55 = vpop.permute.xlu0 %1285  ;;  %v3090_v58 = vld [vmem:[%s3745_s6 + $0x5] ss:$0 sm:$0xff]  ;;  %v3092_v0 = vld [vmem:[%s3745_s6 + $0x7] ss:$0 sm:$0xff] }
 0x592   : > { %v1162_v14 = vmul.f32 %v3088_v30, %v1154_v31  ;;  %v1107_v43 = vmul.f32 %v3086_v57, %v1099_v11  ;;  %v1126_v8 = vmul.f32 %v3898_v10, %v1115_v38  ;;  %v1205_v44 = vsel %vm1204_vm8, %v1202_v20, %v1203_v1  ;;  %v3091_v57 = vld [vmem:[%s3745_s6 + $0x6] ss:$0 sm:$0xff] }
 0x593   : > { %v1137_v39 = vadd.f32 %v1135_v36, %v1110_v29  ;;  %v1180_v45 = vmul.f32 %v3908_v16, %v1169_v33  ;;  %v1189_v50 = vmul.f32 %v3089_v6, %v1181_v24  ;;  %v1153_v49 = vmul.f32 %v3904_v13, %v1142_v15  ;;  %v3093_v29 = vld [vmem:[%s3745_s6 + $0x8] ss:$0 sm:$0xff] }
 0x594   : > { %v1218_v54 = vmul.f32 %v3915_v40, %v1206_v37  ;;  %v1109_v59 = vadd.f32 %v1107_v43, %v1080_v35  ;;  %v1134_v62 = vmul.f32 %v3087_v19, %v1126_v8  ;;  %v1245_v10 = vmul.f32 %v3931_v48, %v1233_v34  ;;  %v1281_v31 = vpop.permute.xlu1 %1280 }
 0x595   : > { %v1164_v56 = vadd.f32 %v1162_v14, %v1137_v39  ;;  %v1199_v63 = vmul.f32 %v3090_v58, %v3921_v42  ;;  %v1232_v16 = vsel %vm1231_vm10, %v1229_v25, %v1230_v4  ;;  %v1161_v18 = vmul.f32 %v3088_v30, %v1153_v49  ;;  %v1308_v33 = vpop.permute.xlu0 %1307 }
 0x596   : > { %v1136_v7 = vadd.f32 %v1134_v62, %v1109_v59  ;;  %v1217_v13 = vmul.f32 %v3929_v47, %v1205_v44  ;;  %v1188_v40 = vmul.f32 %v3089_v6, %v1180_v45  ;;  %v1226_v20 = vmul.f32 %v3091_v57, %v1218_v54  ;;  %v3094_v6 = vld [vmem:[%s3745_s6 + $0x9] ss:$0 sm:$0xff] }
 0x597   : > { %v1191_v1 = vadd.f32 %v1189_v50, %v1164_v56  ;;  %v1267_v21 = vmul.f32 %v1264_v9, %v1061_v60  ;;  %v1244_v24 = vmul.f32 %v1237_v5, %v1232_v16  ;;  %v1253_v48 = vmul.f32 %v3092_v0, %v1245_v10  ;;  %v3095_v5 = vld [vmem:[%s3745_s6 + $0xa] ss:$0 sm:$0xff] }
 0x598   : > { %v1163_v22 = vadd.f32 %v1161_v18, %v1136_v7  ;;  %v1289_v36 = vmul.f32 %v1286_v55, %v1088_v23  ;;  %v1198_v4 = vmul.f32 %v3090_v58, %v3918_v41  ;;  %v1225_v30 = vmul.f32 %v3091_v57, %v1217_v13  ;;  %v1303_v23 = vpop.permute.xlu1 %1302  ;;  %v3495_v18 = vld [vmem:[%s3735_s5] sm:$0xff]   ;;  %v3496_v13 = vld [vmem:[%s3735_s5 + $0x8] sm:$0xff]  }
 0x599   : > { %v1201_v19 = vadd.f32 %v1199_v63, %v1191_v1  ;;  %v1266_v47 = vmul.f32 %v1259_v53, %v3937_v51  ;;  %v1275_v11 = vmul.f32 %v3093_v29, %v1267_v21  ;;  %v1311_v9 = vmul.f32 %v1308_v33, %v1115_v38  ;;  %3229 = vmatpush3.bf16.msra.mxu0 %v3495_v18 }
 0x59a   : > { %v1190_v25 = vadd.f32 %v1188_v40, %v1163_v22  ;;  %v1252_v34 = vmul.f32 %v3092_v0, %v1244_v24  ;;  %v1288_v15 = vmul.f32 %v1281_v31, %v3941_v52  ;;  %v1297_v14 = vmul.f32 %v3094_v6, %v1289_v36  ;;  %3230 = vmatprep.subr.bf16.mxu0 %v3605_v17  ;;  %v3497_v40 = vld [vmem:[%s3740_s25] sm:$0xff]  }
 0x59b   : > { %v1228_v35 = vadd.f32 %v1226_v20, %v1201_v19  ;;  %v1274_v8 = vmul.f32 %v3093_v29, %v1266_v47  ;;  %v1310_v44 = vmul.f32 %v1303_v23, %v3957_v61  ;;  %v1319_v55 = vmul.f32 %v3095_v5, %v1311_v9  ;;  %v3499_v20 = vld [vmem:[%s4346_s2] sm:$0xff]  }
 0x59c   : > { %v1200_v60 = vadd.f32 %v1198_v4, %v1190_v25  ;;  %v1296_v51 = vmul.f32 %v3094_v6, %v1288_v15  ;;  %3248 = vmatprep.mubr.msk.bf16.mxu1 %vm750_vm1, %v3499_v20  ;;  %v1356_v31 = vsub.s32 4, %v3786_v26  ;;  %v3501_v15 = vld [vmem:[%s3750_s30] sm:$0xff]  }
 0x59d   : > { %v1255_v37 = vadd.f32 %v1253_v48, %v1228_v35  ;;  %v1318_v54 = vmul.f32 %v3095_v5, %v1310_v44  ;;  %3231 = vmatpush3.bf16.msra.mxu0 %v3496_v13  ;;  %v1362_v35 = vsub.s32 5, %v3786_v26  ;;  %v3500_v5 = vld [vmem:[%s4346_s2 + $0x8] sm:$0xff]   ;;  %3244 = vmatprep.subr.bf16.mxu1 %v3501_v15 }
 0x59e   : > { %v1227_v43 = vadd.f32 %v1225_v30, %v1200_v60  ;;  %3236 = vmatprep.subr.bf16.mxu0 %v3497_v40  ;;  %v1357_v33 = vrot.slane %v3792_v28, %v1356_v31  ;;  %3245 = vmatpush3.bf16.msra.mxu1 %v3501_v15 }
 0x59f   : > { %v1277_v39 = vadd.f32 %v1275_v11, %v1255_v37  ;;  %v1363_v30 = vrot.slane %v3792_v28, %v1362_v35 }
 0x5a0   : > { %v1254_v50 = vadd.f32 %v1252_v34, %v1227_v43  ;;  %v3498_v34 = vld [vmem:[%s3740_s25 + $0x8] sm:$0xff]   ;;  %s3608_s25 = smov 120  }
 0x5a1   : > { %v1299_v45 = vadd.f32 %v1297_v14, %v1277_v39  ;;  %v3502_v39 = vld [vmem:[%s3750_s30 + $0x8] sm:$0xff]   ;;  %v1373_v14 = vsub.s32 6, %v3786_v26  ;;  %s3609_s30 = smov 112  }
 0x5a2   : > { %v1276_v49 = vadd.f32 %v1274_v8, %v1254_v50  ;;  %3246 = vmatprep.subr.bf16.mxu1 %v3502_v39 }
 0x5a3   : > { %v1321_v53 = vadd.f32 %v1319_v55, %v1299_v45  ;;  %3247 = vmatpush3.bf16.msra.mxu1 %v3502_v39  ;;  %v1374_v43 = vrot.slane %v3792_v28, %v1373_v14 }
 0x5a4   : > { %v1298_v56 = vadd.f32 %v1296_v51, %v1276_v49  ;;  %3258 = vmatprep.subr.bf16.mxu1 %v3605_v17  ;;  %v1441_v51 = vsub.s32 7, %v3786_v26 }
 0x5a5   : > { %v1323_v38 = vadd.f32 %v1321_v53, %v3921_v42 }
 0x5a6   : > { %v1320_v52 = vadd.f32 %v1318_v54, %v1298_v56  ;;  %3249 = vmatmul.mubr.msk.bf16.vlgmr.msra.gmra.mrb[4].mxu1 %vm750_vm1, %v3500_v5  ;;  %v1442_v49 = vrot.slane %v3792_v28, %v1441_v51 }
 0x5a7   : > { %v1325_v58 = vmul.f32 %v1323_v38, %v3857_v46  ;;  %3260 = vmatprep.mubr.msk.bf16.mxu1 %vm3606_vm2, %v3605_v17 }
 0x5a8   : > { %v1322_v62 = vadd.f32 %v1320_v52, %v3918_v41 }
 0x5a9   : > { %v4014_v59 = vadd.f32 %v1325_v58, %v3766_v3 }
 0x5aa   : > { %v1324_v57 = vmul.f32 %v1322_v62, %v3902_v12 }
 0x5ab   : > { %v1331_v61 = vsel %vm750_vm1, %v4014_v59, 0.0 }
 0x5ac   : > { %1332 = vadd.xlane.f32.xlu0 %v1331_v61  ;;  %v4021_v10 = vadd.f32 %v1324_v57, %v3764_v2 }
 0x5ae   : > { %v1328_v42 = vsel %vm750_vm1, %v4021_v10, 0.0 }
 0x5af   : > { %1329 = vadd.xlane.f32.xlu1 %v1328_v42 }
 0x639   : > { %v1333_v46 = vpop.xlane.xlu0 %1332 }
 0x63a   : > { %v1335_v3 = vmul.f32 0.03125, %v1333_v46 }
 0x63c   : > { %v1337_v41 = vsub.f32 %v4014_v59, %v1335_v3  ;;  %v1330_v63 = vpop.xlane.xlu1 %1329 }
 0x63d   : > { %v1334_v0 = vmul.f32 0.03125, %v1330_v63 }
 0x63e   : > { %v1339_v16 = vmul.f32 %v1337_v41, %v1337_v41 }
 0x63f   : > { %v1336_v12 = vsub.f32 %v4021_v10, %v1334_v0 }
 0x640   : > { %v1343_v1 = vsel %vm750_vm1, %v1339_v16, 0.0 }
 0x641   : > { %1344 = vadd.xlane.f32.xlu1 %v1343_v1  ;;  %v1338_v2 = vmul.f32 %v1336_v12, %v1336_v12 }
 0x643   : > { %v1340_v7 = vsel %vm750_vm1, %v1338_v2, 0.0 }
 0x644   : > { %1341 = vadd.xlane.f32.xlu0 %v1340_v7 }
 0x679   : > { %v3250_v16 = vpop.f32.mrb[4].mxu1 }
 0x6ce   : > { %v1345_v21 = vpop.xlane.xlu1 %1344 }
 0x6cf   : > { %v1347_v19 = vmul.f32 0.03125, %v1345_v21 }
 0x6d1   : > { %v1349_v22 = vadd.f32 1e-12, %v1347_v19  ;;  %v1342_v24 = vpop.xlane.xlu0 %1341 }
 0x6d2   : > { %v1346_v29 = vmul.f32 0.03125, %v1342_v24 }
 0x6d3   : > { %3515 = vrsqrt.f32 %v1349_v22 }
 0x6d4   : > { %v1348_v48 = vadd.f32 1e-12, %v1346_v29 }
 0x6d6   : > { %3517 = vrsqrt.f32 %v1348_v48 }
 0x6dd   : > { %v3516_v36 = vpop.eup %3515 }
 0x6de   : > { %v1353_v4 = vmul.f32 %v3516_v36, %v1337_v41 }
 0x6e0   : > { %v1359_v25 = vmul.f32 %v1357_v33, %v1353_v4  ;;  %v3518_v47 = vpop.eup %3517 }
 0x6e1   : > { %v1352_v6 = vmul.f32 %v3518_v47, %v1336_v12  ;;  %v4080_v12 = vpop.f32.mrb[5].mxu1 }
 0x6e2   : > { %v1365_v37 = vadd.f32 %v1363_v30, %v1359_v25  ;;  %v3251_v1 = vpop.f32.mrb[6].mxu1 }
 0x6e3   : > { %v1358_v11 = vmul.f32 %v1357_v33, %v1352_v6  ;;  %v4082_v2 = vpop.f32.mrb[7].mxu1 }
 0x6e5   : > { %v1364_v60 = vadd.f32 %v1363_v30, %v1358_v11 }
 0x6e7   : > { %v1370_v9 = vpack.c.bf16 %v1365_v37, %v1364_v60 }
 0x6e9   : > { %3233 = vmatmul.mubr.msk.bf16.vlgmr.msra.gmra.mrb[4].mxu0 %vm750_vm1, %v1370_v9 }
 0x6ea   : > { %3237 = vmatpush3.bf16.msra.mxu0 %v3497_v40  ;;  %3240 = vmatprep.mubr.msk.bf16.mxu0 %vm750_vm1, %v3499_v20 }
 0x6eb   : > { %3238 = vmatprep.subr.bf16.mxu0 %v3498_v34 }
 0x6ee   : > { %3239 = vmatpush3.bf16.msra.mxu0 %v3498_v34 }
 0x6ef   : > { %3252 = vmatprep.subr.bf16.mxu0 %v3605_v17 }
 0x6f1   : > { %3241 = vmatmul.mubr.msk.bf16.vlgmr.msra.gmra.mrb[8].mxu0 %vm750_vm1, %v3500_v5 }
 0x6f2   : > { %3254 = vmatprep.mubr.msk.bf16.mxu0 %vm3606_vm2, %v3605_v17 }
 0x7bc   : > { %v1424_v8 = vpop.f32.mrb[4].mxu0 }
 0x7bd   : > { %v3234_v23 = vpop.f32.mrb[5].mxu0  ;;  %v1425_v45 = vadd.f32 %v1424_v8, %v1374_v43 }
 0x7be   : > { %v1427_v44 = vpop.f32.mrb[6].mxu0 }
 0x7bf   : > { %v1428_v50 = vadd.f32 %v1427_v44, %v1374_v43  ;;  %v3235_v55 = vpop.f32.mrb[7].mxu0  ;;  %v1609_v0 = vpack.c.bf16 %v1425_v45, %v1425_v45 }
 0x7c1   : > { %v3424_v53 = vpack.i.bf16 %v1428_v50, %v1425_v45  ;;  %v1610_v63 = vpack.c.bf16 %v1428_v50, %v1428_v50  ;;  %v4095_v45 = vld [vmem:[%s3715_s23 + $0x8] sm:$0x3] }
 0x7c4   : > { %v3242_v54 = vpop.f32.mrb[8].mxu0 }
 0x7c5   : > { %v1505_v38 = vpop.f32.mrb[9].mxu0  ;;  %v1514_v58 = vadd.f32 %v3242_v54, %v1442_v49 }
 0x7c6   : > { %v3243_v56 = vpop.f32.mrb[10].mxu0  ;;  %v1506_v61 = vadd.f32 %v1505_v38, %v1442_v49 }
 0x7c7   : > { %v1517_v52 = vadd.f32 %v3243_v56, %v1442_v49  ;;  %v1508_v62 = vpop.f32.mrb[11].mxu0 }
 0x7c8   : > { %v1509_v57 = vadd.f32 %v1508_v62, %v1442_v49 }
 0x7c9   : > { %v3419_v42 = vpack.i.bf16 %v1517_v52, %v1514_v58  ;;  %v1658_v46 = vpack.c.bf16 %v1517_v52, %v1514_v58 }
 0x7ca   : > { %v3414_v3 = vpack.i.bf16 %v1509_v57, %v1506_v61  ;;  %v1657_v41 = vpack.c.bf16 %v1509_v57, %v1506_v61 }
 0x7cb   : > { %3420 = vrot.lane.b32.xlu1 %v3419_v42, %s3608_s25  ;;  %v1772_v26 = vsel %vm1721_vm11, %v1658_v46, 0 }
 0x7cc   : > { %3259 = vmatpush3.bf16.xpose.msra.mxu1 %v1772_v26  ;;  %3415 = vrot.lane.b32.xlu0 %v3414_v3, %s3608_s25  ;;  %v1726_v28 = vsel %vm1721_vm11, %v1657_v41, 0 }
 0x7cd   : > { %3253 = vmatpush3.bf16.xpose.msra.mxu0 %v1726_v28  ;;  %3270 = vmatprep.subr.bf16.mxu1 %v3605_v17 }
 0x7ce   : > { %3264 = vmatprep.subr.bf16.mxu0 %v3605_v17 }
 0x7cf   : > { %3425 = vrot.lane.b32.xlu1 %v3424_v53, %s3608_s25 }
 0x7d0   : > { %3435 = vrot.lane.b32.xlu0 %v3414_v3, %s3609_s30 }
 0x7d3   : > { %3430 = vrot.lane.b32.xlu1 %v3419_v42, %s3609_s30  ;;  %3261 = vmatmul.mubr.msk.bf16.vlgmr.msra.gmra.mrb[8].mxu1 %vm1721_vm11, %v1610_v63  ;;  %v3118_v63 = vld [vmem:[%s4374_s28 + $0x1] ss:$0 sm:$0xff] }
 0x7d4   : > { %3440 = vrot.lane.b32.xlu0 %v3424_v53, %s3609_s30  ;;  %3255 = vmatmul.mubr.msk.bf16.vlgmr.msra.gmra.mrb[12].mxu0 %vm1721_vm11, %v1609_v0 }
 0x7d5   : > { %3272 = vmatprep.mubr.msk.bf16.mxu1 %vm3606_vm2, %v3605_v17  ;;  %3266 = vmatprep.mubr.msk.bf16.mxu0 %vm3606_vm2, %v3605_v17 }
 0x7d7   : > { %3445 = vrot.lane.b32.xlu1 %v3414_v3, %s3610_s26 }
 0x7d8   : > { %3450 = vrot.lane.b32.xlu0 %v3419_v42, %s3610_s26 }
 0x7db   : > { %3455 = vrot.lane.b32.xlu1 %v3424_v53, %s3610_s26  ;;  %v1527_v53 = vrot.slane %v4095_v45, %v3789_v27 }
 0x7dd   : > { %v4107_v52 = vadd.f32 %v3250_v16, %v1527_v53  ;;  %v4109_v62 = vadd.f32 %v3251_v1, %v1527_v53  ;;  %v4114_v27 = vadd.f32 %v4080_v12, %v1527_v53  ;;  %v4117_v57 = vadd.f32 %v4082_v2, %v1527_v53  ;;  %v3117_v1 = vld [vmem:[%s4374_s28] ss:$0 sm:$0xff] }
 0x7df   : > { %v1706_v46 = vpack.c.bf16 %v4109_v62, %v4107_v52  ;;  %v1705_v41 = vpack.c.bf16 %v4117_v57, %v4114_v27 }
 0x83d   : > { %v3421_v7 = vpop.permute.xlu1 %3420 }
 0x83e   : > { %v3423_v18 = vunpack.i.h.bf16 %v3421_v7  ;;  %v3422_v13 = vunpack.i.l.bf16 %v3421_v7  ;;  %v3416_v40 = vpop.permute.xlu0 %3415 }
 0x83f   : > { %v3418_v20 = vunpack.i.h.bf16 %v3416_v40  ;;  %v3417_v21 = vunpack.i.l.bf16 %v3416_v40 }
 0x840   : > { %v1660_v19 = vpack.c.bf16 %v3423_v18, %v3422_v13 }
 0x841   : > { %v1659_v22 = vpack.c.bf16 %v3418_v20, %v3417_v21  ;;  %v3426_v24 = vpop.permute.xlu1 %3425 }
 0x842   : > { %v3436_v29 = vpop.permute.xlu0 %3435  ;;  %v1864_v48 = vsel %vm1721_vm11, %v1660_v19, 0  ;;  %v3428_v36 = vunpack.i.h.bf16 %v3426_v24  ;;  %v3427_v4 = vunpack.i.l.bf16 %v3426_v24 }
 0x843   : > { %v3438_v31 = vunpack.i.h.bf16 %v3436_v29  ;;  %v3437_v33 = vunpack.i.l.bf16 %v3436_v29  ;;  %3271 = vmatpush3.bf16.xpose.msra.mxu1 %v1864_v48  ;;  %v1818_v35 = vsel %vm1721_vm11, %v1659_v22, 0 }
 0x844   : > { %3265 = vmatpush3.bf16.xpose.msra.mxu0 %v1818_v35  ;;  %3282 = vmatprep.subr.bf16.mxu1 %v3605_v17  ;;  %v1612_v37 = vpack.c.bf16 %v3428_v36, %v3428_v36  ;;  %v1611_v9 = vpack.c.bf16 %v3427_v4, %v3427_v4 }
 0x845   : > { %v3431_v25 = vpop.permute.xlu1 %3430  ;;  %3276 = vmatprep.subr.bf16.mxu0 %v3605_v17  ;;  %v1661_v30 = vpack.c.bf16 %v3438_v31, %v3437_v33  ;;  %v3119_v33 = vld [vmem:[%s4374_s28 + $0x2] ss:$0 sm:$0xff] }
 0x846   : > { %v3433_v47 = vunpack.i.h.bf16 %v3431_v25  ;;  %v3432_v6 = vunpack.i.l.bf16 %v3431_v25  ;;  %v3441_v11 = vpop.permute.xlu0 %3440 }
 0x847   : > { %v1910_v39 = vsel %vm1721_vm11, %v1661_v30, 0  ;;  %v3443_v44 = vunpack.i.h.bf16 %v3441_v11  ;;  %v3442_v50 = vunpack.i.l.bf16 %v3441_v11 }
 0x848   : > { %v1662_v60 = vpack.c.bf16 %v3433_v47, %v3432_v6  ;;  %v3120_v6 = vld [vmem:[%s4374_s28 + $0x3] ss:$0 sm:$0xff] }
 0x849   : > { %v3446_v34 = vpop.permute.xlu1 %3445  ;;  %v1614_v49 = vpack.c.bf16 %v3443_v44, %v3443_v44  ;;  %v1613_v54 = vpack.c.bf16 %v3442_v50, %v3442_v50 }
 0x84a   : > { %3273 = vmatmul.mubr.msk.bf16.vlgmr.msra.gmra.mrb[12].mxu1 %vm1721_vm11, %v1612_v37  ;;  %v3451_v5 = vpop.permute.xlu0 %3450  ;;  %v1956_v15 = vsel %vm1721_vm11, %v1662_v60, 0  ;;  %v3448_v14 = vunpack.i.h.bf16 %v3446_v34  ;;  %v3447_v43 = vunpack.i.l.bf16 %v3446_v34 }
 0x84b   : > { %v3453_v8 = vunpack.i.h.bf16 %v3451_v5  ;;  %v3452_v23 = vunpack.i.l.bf16 %v3451_v5  ;;  %3267 = vmatmul.mubr.msk.bf16.vlgmr.msra.gmra.mrb[16].mxu0 %vm1721_vm11, %v1611_v9  ;;  %3283 = vmatpush3.bf16.xpose.msra.mxu1 %v1956_v15  ;;  %v3122_v5 = vld [vmem:[%s4374_s28 + $0x5] ss:$0 sm:$0xff] }
 0x84c   : > { %3277 = vmatpush3.bf16.xpose.msra.mxu0 %v1910_v39  ;;  %3284 = vmatprep.mubr.msk.bf16.mxu1 %vm3606_vm2, %v3605_v17  ;;  %v1663_v51 = vpack.c.bf16 %v3448_v14, %v3447_v43  ;;  %v3121_v43 = vld [vmem:[%s4374_s28 + $0x4] ss:$0 sm:$0xff] }
 0x84d   : > { %3278 = vmatprep.mubr.msk.bf16.mxu0 %vm3606_vm2, %v3605_v17  ;;  %3294 = vmatprep.subr.bf16.mxu1 %v3605_v17  ;;  %v1664_v55 = vpack.c.bf16 %v3453_v8, %v3452_v23  ;;  %v3456_v38 = vpop.permute.xlu1 %3455 }
 0x84e   : > { %3288 = vmatprep.subr.bf16.mxu0 %v3605_v17  ;;  %v2002_v58 = vsel %vm1721_vm11, %v1663_v51, 0  ;;  %v3458_v61 = vunpack.i.h.bf16 %v3456_v38  ;;  %v3457_v42 = vunpack.i.l.bf16 %v3456_v38 }
 0x84f   : > { %v2048_v56 = vsel %vm1721_vm11, %v1664_v55, 0 }
 0x850   : > { %v1616_v3 = vpack.c.bf16 %v3458_v61, %v3458_v61  ;;  %v1615_v26 = vpack.c.bf16 %v3457_v42, %v3457_v42  ;;  %v3124_v61 = vld [vmem:[%s4374_s28 + $0x7] ss:$0 sm:$0xff] }
 0x852   : > { %3285 = vmatmul.mubr.msk.bf16.vlgmr.msra.gmra.mrb[16].mxu1 %vm1721_vm11, %v1614_v49 }
 0x853   : > { %3279 = vmatmul.mubr.msk.bf16.vlgmr.msra.gmra.mrb[20].mxu0 %vm1721_vm11, %v1613_v54  ;;  %3295 = vmatpush3.bf16.xpose.msra.mxu1 %v2048_v56 }
 0x854   : > { %3289 = vmatpush3.bf16.xpose.msra.mxu0 %v2002_v58  ;;  %3296 = vmatprep.mubr.msk.bf16.mxu1 %vm3606_vm2, %v3605_v17 }
 0x855   : > { %3290 = vmatprep.mubr.msk.bf16.mxu0 %vm3606_vm2, %v3605_v17  ;;  %3300 = vmatprep.subr.bf16.mxu0 %v3605_v17 }
 0x856   : > { %3306 = vmatprep.subr.bf16.mxu1 %v3605_v17 }
 0x85a   : > { %3297 = vmatmul.mubr.msk.bf16.vlgmr.msra.gmra.mrb[20].mxu1 %vm1721_vm11, %v1616_v3 }
 0x85b   : > { %3291 = vmatmul.mubr.msk.bf16.vlgmr.msra.gmra.mrb[24].mxu0 %vm1721_vm11, %v1615_v26  ;;  %3307 = vmatpush3.bf16.msra.mxu1 %v1706_v46 }
 0x85c   : > { %3301 = vmatpush3.bf16.msra.mxu0 %v1705_v41  ;;  %3308 = vmatprep.mubr.msk.bf16.mxu1 %vm3606_vm2, %v3605_v17  ;;  %v3123_v41 = vld [vmem:[%s4374_s28 + $0x6] ss:$0 sm:$0xff] }
 0x85d   : > { %3302 = vmatprep.mubr.msk.bf16.mxu0 %vm3606_vm2, %v3605_v17  ;;  %3312 = vmatprep.subr.bf16.mxu0 %v3605_v17 }
 0x85e   : > { %3318 = vmatprep.subr.bf16.mxu1 %v3605_v17 }
 0x8a6   : > { %v1808_v28 = vpop.f32.mrb[8].mxu1 }
 0x8a7   : > { %v2091_v0 = vmul.f32 0.35355338, %v1808_v28  ;;  %v1762_v16 = vpop.f32.mrb[12].mxu0  ;;  %v3262_v12 = vpop.f32.mrb[9].mxu1 }
 0x8a8   : > { %v2090_v2 = vmul.f32 0.35355338, %v1762_v16  ;;  %v3256_v7 = vpop.f32.mrb[13].mxu0  ;;  %v1811_v18 = vpop.f32.mrb[10].mxu1 }
 0x8a9   : > { %v1765_v13 = vpop.f32.mrb[14].mxu0  ;;  %v3263_v40 = vpop.f32.mrb[11].mxu1  ;;  %v4141_v20 = vadd.f32 %v3118_v63, %v2091_v0 }
 0x8aa   : > { %v3257_v21 = vpop.f32.mrb[15].mxu0  ;;  %v4143_v19 = vadd.f32 %v3117_v1, %v2090_v2 }
 0x8ab   : > { %v2158_v22 = vsel %vm2154_vm12, %v4141_v20, -inf }
 0x8ac   : > { %2159 = vmax.xlane.f32.xlu1 %v2158_v22  ;;  %v2155_v24 = vsel %vm2154_vm12, %v4143_v19, -inf  ;;  %v4188_v22 = vpack.i.bf16 %v4117_v57, %v4114_v27  ;;  %v3474_v27 = vpack.i.bf16 %v4109_v62, %v4107_v52 }
 0x8ad   : > { %2156 = vmax.xlane.f32.xlu0 %v2155_v24 }
 0x91d   : > { %v1900_v29 = vpop.f32.mrb[12].mxu1 }
 0x91e   : > { %v1854_v48 = vpop.f32.mrb[16].mxu0  ;;  %v3274_v31 = vpop.f32.mrb[13].mxu1  ;;  %v2093_v35 = vmul.f32 0.35355338, %v1900_v29 }
 0x91f   : > { %v2092_v36 = vmul.f32 0.35355338, %v1854_v48  ;;  %v3268_v4 = vpop.f32.mrb[17].mxu0  ;;  %v1903_v25 = vpop.f32.mrb[14].mxu1 }
 0x920   : > { %v1857_v30 = vpop.f32.mrb[18].mxu0  ;;  %v3275_v47 = vpop.f32.mrb[15].mxu1  ;;  %v4159_v9 = vadd.f32 %v3120_v6, %v2093_v35 }
 0x921   : > { %v3269_v11 = vpop.f32.mrb[19].mxu0  ;;  %v4155_v37 = vadd.f32 %v3119_v33, %v2092_v36 }
 0x922   : > { %v2164_v50 = vsel %vm2154_vm12, %v4159_v9, -inf }
 0x923   : > { %v2161_v60 = vsel %vm2154_vm12, %v4155_v37, -inf }
 0x924   : > { %2162 = vmax.xlane.f32.xlu0 %v2161_v60 }
 0x925   : > { %v1992_v34 = vpop.f32.mrb[16].mxu1 }
 0x926   : > { %v2095_v15 = vmul.f32 0.35355338, %v1992_v34  ;;  %v1946_v39 = vpop.f32.mrb[20].mxu0  ;;  %v3286_v14 = vpop.f32.mrb[17].mxu1 }
 0x927   : > { %v2094_v8 = vmul.f32 0.35355338, %v1946_v39  ;;  %v3280_v23 = vpop.f32.mrb[21].mxu0  ;;  %v1995_v44 = vpop.f32.mrb[18].mxu1 }
 0x928   : > { %v3287_v55 = vpop.f32.mrb[19].mxu1  ;;  %2165 = vmax.xlane.f32.xlu0 %v2164_v50  ;;  %v1949_v51 = vpop.f32.mrb[22].mxu0  ;;  %v4169_v53 = vadd.f32 %v3122_v5, %v2095_v15 }
 0x929   : > { %v3281_v49 = vpop.f32.mrb[23].mxu0  ;;  %v2150_v54 = vadd.f32 %v3121_v43, %v2094_v8 }
 0x92a   : > { %v2170_v38 = vsel %vm2154_vm12, %v4169_v53, -inf }
 0x92b   : > { %v2167_v56 = vsel %vm2154_vm12, %v2150_v54, -inf }
 0x92c   : > { %2171 = vmax.xlane.f32.xlu0 %v2170_v38  ;;  %2168 = vmax.xlane.f32.xlu1 %v2167_v56 }
 0x92d   : > { %v2084_v58 = vpop.f32.mrb[20].mxu1 }
 0x92e   : > { %v2097_v42 = vmul.f32 0.35355338, %v2084_v58  ;;  %v2038_v46 = vpop.f32.mrb[24].mxu0  ;;  %v3298_v3 = vpop.f32.mrb[21].mxu1 }
 0x92f   : > { %v2096_v26 = vmul.f32 0.35355338, %v2038_v46  ;;  %v3292_v28 = vpop.f32.mrb[25].mxu0  ;;  %v2087_v63 = vpop.f32.mrb[22].mxu1 }
 0x930   : > { %v2041_v0 = vpop.f32.mrb[26].mxu0  ;;  %v3299_v16 = vpop.f32.mrb[23].mxu1  ;;  %v4180_v12 = vadd.f32 %v3124_v61, %v2097_v42 }
 0x931   : > { %v3293_v1 = vpop.f32.mrb[27].mxu0  ;;  %v2152_v2 = vadd.f32 %v3123_v41, %v2096_v26 }
 0x932   : > { %v2176_v7 = vsel %vm2154_vm12, %v4180_v12, -inf }
 0x933   : > { %2177 = vmax.xlane.f32.xlu0 %v2176_v7  ;;  %v2173_v18 = vsel %vm2154_vm12, %v2152_v2, -inf }
 0x934   : > { %2174 = vmax.xlane.f32.xlu1 %v2173_v18 }
 0x939   : > { %v2160_v13 = vpop.xlane.xlu1 %2159 }
 0x93a   : > { %v2180_v40 = vsub.f32 %v4141_v20, %v2160_v13  ;;  %v2157_v48 = vpop.xlane.xlu0 %2156 }
 0x93b   : > { %v2179_v31 = vsub.f32 %v4143_v19, %v2157_v48 }
 0x93c   : > { %v2189_v21 = vmul.f32 1.442695, %v2180_v40 }
 0x93d   : > { %v2187_v33 = vmul.f32 1.442695, %v2179_v31 }
 0x93e   : > { %3519 = vpow2.f32 %v2189_v21 }
 0x93f   : > { %3521 = vpow2.f32 %v2187_v33 }
 0x945   : > { %3460 = vrot.lane.b32.xlu1 %v4188_v22, %s3608_s25 }
 0x948   : > { %v3520_v24 = vpop.eup %3519 }
 0x949   : > { %v2206_v29 = vsel %vm2154_vm12, %v3520_v24, 0.0  ;;  %v4194_v35 = vpop.eup %3521 }
 0x94a   : > { %2207 = vadd.xlane.f32.xlu0 %v2206_v29  ;;  %v2203_v20 = vsel %vm2154_vm12, %v4194_v35, 0.0 }
 0x969   : > { %2204 = vadd.xlane.f32.xlu1 %v2203_v20 }
 0x97a   : > { %3470 = vrot.lane.b32.xlu1 %v4188_v22, %s3609_s30 }
 0x97e   : > { %3475 = vrot.lane.b32.xlu1 %v3474_v27, %s3609_s30 }
 0x9b1   : > { %v2163_v57 = vpop.xlane.xlu0 %2162 }
 0x9b2   : > { %v2181_v36 = vsub.f32 %v4155_v37, %v2163_v57 }
 0x9b4   : > { %v2191_v19 = vmul.f32 1.442695, %v2181_v36 }
 0x9b5   : > { %v2166_v4 = vpop.xlane.xlu0 %2165 }
 0x9b6   : > { %3523 = vpow2.f32 %v2191_v19  ;;  %v2182_v25 = vsub.f32 %v4159_v9, %v2166_v4 }
 0x9b8   : > { %v2193_v30 = vmul.f32 1.442695, %v2182_v25 }
 0x9b9   : > { %v2169_v47 = vpop.xlane.xlu1 %2168  ;;  %v2172_v14 = vpop.xlane.xlu0 %2171 }
 0x9ba   : > { %3525 = vpow2.f32 %v2193_v30  ;;  %v2183_v6 = vsub.f32 %v2150_v54, %v2169_v47  ;;  %v2184_v51 = vsub.f32 %v4169_v53, %v2172_v14 }
 0x9bc   : > { %v2195_v11 = vmul.f32 1.442695, %v2183_v6  ;;  %v2197_v54 = vmul.f32 1.442695, %v2184_v51 }
 0x9be   : > { %3527 = vpow2.f32 %v2195_v11 }
 0x9c0   : > { %v4205_v60 = vpop.eup %3523  ;;  %v2178_v23 = vpop.xlane.xlu0 %2177 }
 0x9c1   : > { %v2175_v34 = vpop.xlane.xlu1 %2174  ;;  %v2209_v52 = vsel %vm2154_vm12, %v4205_v60, 0.0  ;;  %v2186_v38 = vsub.f32 %v4180_v12, %v2178_v23 }
 0x9c2   : > { %v2185_v62 = vsub.f32 %v2152_v2, %v2175_v34  ;;  %2210 = vadd.xlane.f32.xlu1 %v2209_v52 }
 0x9c3   : > { %v2201_v56 = vmul.f32 1.442695, %v2186_v38 }
 0x9c4   : > { %v4209_v37 = vpop.eup %3525  ;;  %v2199_v5 = vmul.f32 1.442695, %v2185_v62 }
 0x9c5   : > { %v2212_v9 = vsel %vm2154_vm12, %v4209_v37, 0.0  ;;  %v3461_v58 = vpop.permute.xlu1 %3460 }
 0x9c6   : > { %3529 = vpow2.f32 %v2199_v5  ;;  %2213 = vadd.xlane.f32.xlu0 %v2212_v9  ;;  %v3463_v26 = vunpack.i.h.bf16 %v3461_v58  ;;  %v3462_v28 = vunpack.i.l.bf16 %v3461_v58 }
 0x9c8   : > { %v4213_v15 = vpop.eup %3527  ;;  %v1707_v16 = vpack.c.bf16 %v3463_v26, %v3462_v28 }
 0x9c9   : > { %v2215_v39 = vsel %vm2154_vm12, %v4213_v15, 0.0 }
 0x9ca   : > { %2216 = vadd.xlane.f32.xlu1 %v2215_v39 }
 0x9d0   : > { %v4217_v43 = vpop.eup %3529 }
 0x9d1   : > { %v2221_v8 = vsel %vm2154_vm12, %v4217_v43, 0.0 }
 0x9d2   : > { %2222 = vadd.xlane.f32.xlu1 %v2221_v8 }
 0x9d7   : > { %v2208_v44 = vpop.xlane.xlu0 %2207 }
 0x9d8   : > { %3531 = vrcp.f32 %v2208_v44  ;;  %v2599_v44 = vld [vmem:[%s3755_s21] sm:$0xf] }
 0x9d9   : > { %3533 = vpow2.f32 %v2197_v54  ;;  %v2608_v54 = vsel %vm2606_vm13, %v2599_v44, 0 }
 0x9da   : > { %3535 = vpow2.f32 %v2201_v56  ;;  %v2600_v56 = vld [vmem:[%s3755_s21 + $0x4] sm:$0xf] }
 0x9db   : > { %v2655_v58 = vsel %vm2606_vm13, %v2600_v56, 0 }
 0x9dc   : > { %3465 = vrot.lane.b32.xlu0 %v3474_v27, %s3608_s25 }
 0x9e2   : > { %v3532_v50 = vpop.eup %3531 }
 0x9e3   : > { %v2236_v55 = vmul.f32 %v3532_v50, %v3520_v24  ;;  %3485 = vrot.lane.b32.xlu1 %v3474_v27, %s3610_s26  ;;  %v4228_v42 = vpop.eup %3533 }
 0x9e4   : > { %v2218_v53 = vsel %vm2154_vm12, %v4228_v42, 0.0  ;;  %v4232_v46 = vpop.eup %3535 }
 0x9e5   : > { %v2244_v49 = vpack.c.bf16 %v2236_v55, %v2236_v55  ;;  %v2224_v3 = vsel %vm2154_vm12, %v4232_v46, 0.0 }
 0x9e7   : > { %3309 = vmatmul.mubr.msk.bf16.vlgmr.msra.gmra.mrb[24].mxu1 %vm2154_vm12, %v2244_v49 }
 0x9e8   : > { %3320 = vmatprep.mubr.msk.bf16.mxu1 %vm3606_vm2, %v3605_v17 }
 0x9f6   : > { %v2205_v61 = vpop.xlane.xlu1 %2204 }
 0x9f7   : > { %3537 = vrcp.f32 %v2205_v61 }
 0x9fa   : > { %v3471_v12 = vpop.permute.xlu1 %3470 }
 0x9fb   : > { %2219 = vadd.xlane.f32.xlu0 %v2218_v53  ;;  %v3473_v29 = vunpack.i.h.bf16 %v3471_v12  ;;  %v3472_v48 = vunpack.i.l.bf16 %v3471_v12 }
 0x9fd   : > { %v1709_v20 = vpack.c.bf16 %v3473_v29, %v3472_v48 }
 0x9fe   : > { %v3476_v1 = vpop.permute.xlu1 %3475 }
 0x9ff   : > { %2225 = vadd.xlane.f32.xlu0 %v2224_v3  ;;  %v3478_v27 = vunpack.i.h.bf16 %v3476_v1  ;;  %v3477_v57 = vunpack.i.l.bf16 %v3476_v1 }
 0xa01   : > { %v3538_v41 = vpop.eup %3537  ;;  %v1710_v4 = vpack.c.bf16 %v3478_v27, %v3477_v57 }
 0xa02   : > { %v2235_v63 = vmul.f32 %v3538_v41, %v4194_v35 }
 0xa04   : > { %v2243_v0 = vpack.c.bf16 %v2235_v63, %v2235_v63 }
 0xa06   : > { %3303 = vmatmul.mubr.msk.bf16.vlgmr.msra.gmra.mrb[28].mxu0 %vm2154_vm12, %v2243_v0  ;;  %v2601_v0 = vld [vmem:[%s3755_s21 + $0x8] sm:$0xf] }
 0xa07   : > { %3313 = vmatpush3.bf16.msra.mxu0 %v1707_v16  ;;  %3314 = vmatprep.mubr.msk.bf16.mxu0 %vm3606_vm2, %v3605_v17  ;;  %v2702_v16 = vsel %vm2606_vm13, %v2601_v0, 0 }
 0xa08   : > { %3324 = vmatprep.subr.bf16.mxu0 %v3605_v17 }
 0xa15   : > { %3480 = vrot.lane.b32.xlu0 %v4188_v22, %s3610_s26 }
 0xa4f   : > { %v2211_v2 = vpop.xlane.xlu1 %2210 }
 0xa50   : > { %3539 = vrcp.f32 %v2211_v2 }
 0xa53   : > { %v2214_v7 = vpop.xlane.xlu0 %2213 }
 0xa54   : > { %3541 = vrcp.f32 %v2214_v7  ;;  %v2602_v7 = vld [vmem:[%s3755_s21 + $0xc] sm:$0xf] }
 0xa57   : > { %v3466_v18 = vpop.permute.xlu0 %3465  ;;  %v2217_v21 = vpop.xlane.xlu1 %2216 }
 0xa58   : > { %v3468_v13 = vunpack.i.h.bf16 %v3466_v18  ;;  %v3467_v40 = vunpack.i.l.bf16 %v3466_v18  ;;  %3543 = vrcp.f32 %v2217_v21 }
 0xa5a   : > { %v3540_v24 = vpop.eup %3539  ;;  %v1708_v31 = vpack.c.bf16 %v3468_v13, %v3467_v40 }
 0xa5b   : > { %v2237_v33 = vmul.f32 %v3540_v24, %v4205_v60  ;;  %v2749_v24 = vsel %vm2606_vm13, %v2602_v7, 0 }
 0xa5c   : > { %3319 = vmatpush3.bf16.msra.mxu1 %v1708_v31 }
 0xa5d   : > { %v2245_v35 = vpack.c.bf16 %v2237_v33, %v2237_v33  ;;  %3330 = vmatprep.subr.bf16.mxu1 %v3605_v17 }
 0xa5e   : > { %v3542_v22 = vpop.eup %3541 }
 0xa5f   : > { %v2238_v36 = vmul.f32 %v3542_v22, %v4209_v37  ;;  %3315 = vmatmul.mubr.msk.bf16.vlgmr.msra.gmra.mrb[32].mxu0 %vm2154_vm12, %v2245_v35  ;;  %v2223_v6 = vpop.xlane.xlu1 %2222 }
 0xa60   : > { %3325 = vmatpush3.bf16.msra.mxu0 %v1709_v20  ;;  %3326 = vmatprep.mubr.msk.bf16.mxu0 %vm3606_vm2, %v3605_v17  ;;  %3545 = vrcp.f32 %v2223_v6 }
 0xa61   : > { %v2246_v19 = vpack.c.bf16 %v2238_v36, %v2238_v36  ;;  %3336 = vmatprep.subr.bf16.mxu0 %v3605_v17 }
 0xa62   : > { %v3544_v25 = vpop.eup %3543 }
 0xa63   : > { %3321 = vmatmul.mubr.msk.bf16.vlgmr.msra.gmra.mrb[28].mxu1 %vm2154_vm12, %v2246_v19  ;;  %v2239_v30 = vmul.f32 %v3544_v25, %v4213_v15  ;;  %v3486_v52 = vpop.permute.xlu1 %3485 }
 0xa64   : > { %3331 = vmatpush3.bf16.msra.mxu1 %v1710_v4  ;;  %3332 = vmatprep.mubr.msk.bf16.mxu1 %vm3606_vm2, %v3605_v17  ;;  %v3488_v39 = vunpack.i.h.bf16 %v3486_v52  ;;  %v3487_v14 = vunpack.i.l.bf16 %v3486_v52 }
 0xa65   : > { %3342 = vmatprep.subr.bf16.mxu1 %v3605_v17  ;;  %v2247_v47 = vpack.c.bf16 %v2239_v30, %v2239_v30 }
 0xa66   : > { %v1712_v49 = vpack.c.bf16 %v3488_v39, %v3487_v14 }
 0xa67   : > { %3327 = vmatmul.mubr.msk.bf16.vlgmr.msra.gmra.mrb[36].mxu0 %vm2154_vm12, %v2247_v47 }
 0xa68   : > { %3338 = vmatprep.mubr.msk.bf16.mxu0 %vm3606_vm2, %v3605_v17 }
 0xa6a   : > { %v3546_v34 = vpop.eup %3545 }
 0xa6b   : > { %v2241_v9 = vmul.f32 %v3546_v34, %v4217_v43 }
 0xa6d   : > { %v2249_v55 = vpack.c.bf16 %v2241_v9, %v2241_v9 }
 0xa88   : > { %v2220_v11 = vpop.xlane.xlu0 %2219 }
 0xa89   : > { %3547 = vrcp.f32 %v2220_v11 }
 0xa8c   : > { %v2226_v60 = vpop.xlane.xlu0 %2225 }
 0xa8d   : > { %3549 = vrcp.f32 %v2226_v60 }
 0xa90   : > { %v3481_v62 = vpop.permute.xlu0 %3480 }
 0xa91   : > { %v3483_v37 = vunpack.i.h.bf16 %v3481_v62  ;;  %v3482_v5 = vunpack.i.l.bf16 %v3481_v62 }
 0xa93   : > { %v3548_v15 = vpop.eup %3547  ;;  %v1711_v8 = vpack.c.bf16 %v3483_v37, %v3482_v5 }
 0xa94   : > { %v2240_v23 = vmul.f32 %v3548_v15, %v4228_v42 }
 0xa95   : > { %3337 = vmatpush3.bf16.msra.mxu0 %v1711_v8 }
 0xa96   : > { %v2248_v50 = vpack.c.bf16 %v2240_v23, %v2240_v23  ;;  %3348 = vmatprep.subr.bf16.mxu0 %v3605_v17 }
 0xa97   : > { %v3550_v51 = vpop.eup %3549 }
 0xa98   : > { %3333 = vmatmul.mubr.msk.bf16.vlgmr.msra.gmra.mrb[32].mxu1 %vm2154_vm12, %v2248_v50  ;;  %3339 = vmatmul.mubr.msk.bf16.vlgmr.msra.gmra.mrb[40].mxu0 %vm2154_vm12, %v2249_v55  ;;  %v2242_v43 = vmul.f32 %v3550_v51, %v4232_v46 }
 0xa99   : > { %3343 = vmatpush3.bf16.msra.mxu1 %v1712_v49  ;;  %3344 = vmatprep.mubr.msk.bf16.mxu1 %vm3606_vm2, %v3605_v17 }
 0xa9a   : > { %3349 = vmatpush3.bf16.msra.mxu0 %v2608_v54  ;;  %3350 = vmatprep.mubr.msk.bf16.mxu0 %vm3606_vm2, %v3605_v17  ;;  %v2250_v38 = vpack.c.bf16 %v2242_v43, %v2242_v43 }
 0xa9b   : > { %3354 = vmatprep.subr.bf16.mxu1 %v3605_v17  ;;  %3360 = vmatprep.subr.bf16.mxu0 %v3605_v17 }
 0xaa0   : > { %3345 = vmatmul.mubr.msk.bf16.vlgmr.msra.gmra.mrb[36].mxu1 %vm2154_vm12, %v2250_v38 }
 0xaa1   : > { %3356 = vmatprep.mubr.msk.bf16.mxu1 %vm3606_vm2, %v3605_v17  ;;  %3355 = vmatpush3.bf16.msra.mxu1 %v2655_v58 }
 0xaa2   : > { %3366 = vmatprep.subr.bf16.mxu1 %v3605_v17 }
 0xaba   : > { %v2331_v61 = vpop.f32.mrb[24].mxu1 }
 0xabb   : > { %v3310_v42 = vpop.f32.mrb[25].mxu1 }
 0xabc   : > { %v2334_v53 = vpop.f32.mrb[26].mxu1 }
 0xabd   : > { %v3311_v46 = vpop.f32.mrb[27].mxu1 }
 0xabe   : > { %v2809_v46 = vrot.slane %v4095_v45, %v3797_v32 }
 0xad9   : > { %v2288_v3 = vpop.f32.mrb[28].mxu0 }
 0xada   : > { %v2595_v41 = vpack.c.bf16 %v2331_v61, %v2288_v3  ;;  %v3304_v26 = vpop.f32.mrb[29].mxu0 }
 0xadb   : > { %v2291_v28 = vpop.f32.mrb[30].mxu0 }
 0xadc   : > { %v3305_v63 = vpop.f32.mrb[31].mxu0  ;;  %3351 = vmatmul.mubr.msk.bf16.vlgmr.msra.gmra.mrb[44].mxu0 %vm1721_vm11, %v2595_v41 }
 0xadd   : > { %3362 = vmatprep.mubr.msk.bf16.mxu0 %vm3606_vm2, %v3605_v17  ;;  %3361 = vmatpush3.bf16.msra.mxu0 %v2702_v16 }
 0xb32   : > { %v2374_v12 = vpop.f32.mrb[32].mxu0 }
 0xb33   : > { %v3316_v1 = vpop.f32.mrb[33].mxu0 }
 0xb34   : > { %v2377_v2 = vpop.f32.mrb[34].mxu0 }
 0xb35   : > { %v3317_v18 = vpop.f32.mrb[35].mxu0 }
 0xb36   : > { %v2417_v13 = vpop.f32.mrb[28].mxu1 }
 0xb37   : > { %v2596_v40 = vpack.c.bf16 %v2417_v13, %v2374_v12  ;;  %v3322_v21 = vpop.f32.mrb[29].mxu1 }
 0xb38   : > { %v2420_v29 = vpop.f32.mrb[30].mxu1 }
 0xb39   : > { %v3323_v48 = vpop.f32.mrb[31].mxu1  ;;  %3357 = vmatmul.mubr.msk.bf16.vlgmr.msra.gmra.mrb[40].mxu1 %vm1721_vm11, %v2596_v40 }
 0xb3a   : > { %3367 = vmatpush3.bf16.msra.mxu1 %v2749_v24  ;;  %3368 = vmatprep.mubr.msk.bf16.mxu1 %vm3606_vm2, %v3605_v17  ;;  %v2460_v31 = vpop.f32.mrb[36].mxu0 }
 0xb3b   : > { %v3328_v33 = vpop.f32.mrb[37].mxu0 }
 0xb3c   : > { %v2463_v35 = vpop.f32.mrb[38].mxu0 }
 0xb3d   : > { %v3329_v22 = vpop.f32.mrb[39].mxu0 }
 0xb6b   : > { %v2503_v20 = vpop.f32.mrb[32].mxu1  ;;  %v2546_v27 = vpop.f32.mrb[40].mxu0 }
 0xb6c   : > { %v2597_v57 = vpack.c.bf16 %v2503_v20, %v2460_v31  ;;  %v3334_v36 = vpop.f32.mrb[33].mxu1  ;;  %v3340_v19 = vpop.f32.mrb[41].mxu0 }
 0xb6d   : > { %v2506_v4 = vpop.f32.mrb[34].mxu1  ;;  %v2549_v25 = vpop.f32.mrb[42].mxu0 }
 0xb6e   : > { %v3335_v30 = vpop.f32.mrb[35].mxu1  ;;  %v3341_v47 = vpop.f32.mrb[43].mxu0  ;;  %3363 = vmatmul.mubr.msk.bf16.vlgmr.msra.gmra.mrb[48].mxu0 %vm1721_vm11, %v2597_v57 }
 0xb73   : > { %v2589_v6 = vpop.f32.mrb[36].mxu1 }
 0xb74   : > { %v2598_v11 = vpack.c.bf16 %v2589_v6, %v2546_v27  ;;  %v3346_v60 = vpop.f32.mrb[37].mxu1 }
 0xb75   : > { %v2592_v34 = vpop.f32.mrb[38].mxu1 }
 0xb76   : > { %v3347_v17 = vpop.f32.mrb[39].mxu1  ;;  %3369 = vmatmul.mubr.msk.bf16.vlgmr.msra.gmra.mrb[44].mxu1 %vm1721_vm11, %v2598_v11 }
 0xbaf   : > { %v2644_v52 = vpop.f32.mrb[44].mxu0 }
 0xbb0   : > { %v3352_v62 = vpop.f32.mrb[45].mxu0  ;;  %v2792_v15 = vsel %vm750_vm1, %v2644_v52, 0.0 }
 0xbb1   : > { %v2647_v37 = vpop.f32.mrb[46].mxu0 }
 0xbb2   : > { %v3353_v5 = vpop.f32.mrb[47].mxu0  ;;  %v2799_v44 = vsel %vm750_vm1, %v2647_v37, 0.0 }
 0xc0c   : > { %v2691_v9 = vpop.f32.mrb[40].mxu1 }
 0xc0d   : > { %v2793_v39 = vsel %vm750_vm1, %v2691_v9, 0.0  ;;  %v3358_v14 = vpop.f32.mrb[41].mxu1 }
 0xc0e   : > { %v2794_v8 = vadd.f32 %v2793_v39, %v2792_v15  ;;  %v2694_v23 = vpop.f32.mrb[42].mxu1 }
 0xc0f   : > { %v2800_v50 = vsel %vm750_vm1, %v2694_v23, 0.0  ;;  %v3359_v55 = vpop.f32.mrb[43].mxu1 }
 0xc10   : > { %v2801_v51 = vadd.f32 %v2800_v50, %v2799_v44 }
 0xc41   : > { %v2738_v49 = vpop.f32.mrb[48].mxu0 }
 0xc42   : > { %v2795_v54 = vsel %vm750_vm1, %v2738_v49, 0.0  ;;  %v3364_v43 = vpop.f32.mrb[49].mxu0 }
 0xc43   : > { %v2796_v38 = vadd.f32 %v2795_v54, %v2794_v8  ;;  %v2741_v56 = vpop.f32.mrb[50].mxu0 }
 0xc44   : > { %v2802_v58 = vsel %vm750_vm1, %v2741_v56, 0.0  ;;  %v3365_v61 = vpop.f32.mrb[51].mxu0 }
 0xc45   : > { %v2803_v42 = vadd.f32 %v2802_v58, %v2801_v51 }
 0xc49   : > { %v2785_v53 = vpop.f32.mrb[44].mxu1 }
 0xc4a   : > { %v2797_v3 = vsel %vm750_vm1, %v2785_v53, 0.0  ;;  %v3370_v41 = vpop.f32.mrb[45].mxu1 }
 0xc4b   : > { %v2798_v26 = vadd.f32 %v2797_v3, %v2796_v38  ;;  %v2788_v28 = vpop.f32.mrb[46].mxu1 }
 0xc4c   : > { %v2804_v63 = vsel %vm750_vm1, %v2788_v28, 0.0  ;;  %v3371_v0 = vpop.f32.mrb[47].mxu1 }
 0xc4d   : > { %v2810_v16 = vadd.f32 %v2809_v46, %v2798_v26  ;;  %v2805_v12 = vadd.f32 %v2804_v63, %v2803_v42  ;;  %2819 = sbr.rel (%p3137_p6) target bundleno = 3156 (0xc54), region = 84 }
 0xc4f   : > { %v2812_v1 = vadd.f32 %v2810_v16, %v4021_v10  ;;  %v2811_v2 = vadd.f32 %v2809_v46, %v2805_v12 }
 0xc51   : > { %2814 = vst.msk [vmem:[#allocation2] sm:$0xff] %vm750_vm1, %v2812_v1  ;;  %v2813_v7 = vadd.f32 %v2811_v2, %v4014_v59  ;;  %2820 = vst.msk [vmem:[#allocation3] sm:$0xff] (!%p3137_p6), %vm750_vm1, %v2812_v1 }
 0xc53   : > { %2815 = vst.msk [vmem:[#allocation2 + $0x8] sm:$0xff] %vm750_vm1, %v2813_v7  ;;  %2821 = vst.msk [vmem:[#allocation3 + $0x8] sm:$0xff] (!%p3137_p6), %vm750_vm1, %v2813_v7 }
 0xc54 PF: > { %s4375_s21 = sld [smem:[#allocation7_spill]]  ;;  %s3611_s26 = smov [#allocation3]  }
 0xc55   : > { %s2831_s27 = sshll.u32 %s3611_s26, 4  ;;  %s2832_s27 = int_to_ptr.vmem [resolvable:$true] %s2831_s27 }
 0xc56   : > { %s3551_s14 = scalar_lea.vmem %s2832_s27, 256  ;;  %p3558_p11 = scmp.lt.s32.totalorder %s2832_s27, %s2832_s27 }
 0xc57   : > { %p3552_p8 = scmp.ne.s32.totalorder %s2832_s27, %s3551_s14  ;;  %p3559_p12 = scmp.lt.s32.totalorder %s3551_s14, %s3551_s14 }
 0xc59   : > { %p3560_p13 = por %p3559_p12, %p3558_p11 }
 0xc5a   : > { %s4376_s25 = sadd.s32 4294967295, %s4375_s21  }
 0xc5b   : > { %p4309_p7 = scmp.eq.s32.totalorder %s4376_s25, 1 }
 0xc5d   : > { %p3553_p9 = pnand %p3552_p8, %p4309_p7 }
 0xc5f   : > { %p3554_p10 = pneg %p3553_p9 }
 0xc61   : > { %p3561_p0 = pnand %p3560_p13, %p3554_p10 }
 0xc63   : > { %3564 = shalt.err (!%p3561_p0)
}
 0xc64   : > { %s4378_s18 = sld [smem:[#allocation13_spill]] }
 0xc6a   : > { %s3565_s22 = scalar_lea.hbm %s4378_s18, 256 }
 0xc6b   : > { %p3566_p1 = scmp.ne.s32.totalorder %s4378_s18, %s3565_s22  ;;  %p3571_p4 = scmp.lt.u32.totalorder %s3565_s22, %s4378_s18 }
 0xc6d   : > { %p3567_p2 = pnand %p3566_p1, %p4309_p7 }
 0xc6f   : > { %p3568_p3 = pneg %p3567_p2 }
 0xc71   : > { %p3573_p5 = pnand %p3571_p4, %p3568_p3 }
 0xc73   : > { %3576 = shalt.err (!%p3573_p5)
}
 0xc74   : > { %s3612_s16 = smov 128   ;;  %s3613_s6 = smov 8  }
 0xc75   : > { %3374 = dma.vmem_to_hbm [thread:$0]  (%p4309_p7), %s2832_s27, 256, %s4378_s18, [#allocation4], %s3612_s16, %s3612_s16, %s3613_s6  }
 0xc76   : > { %3590 = dma.done.wait (%p4309_p7), [#allocation4], 256  }
 0xc77   : > { %3592 = vsyncadd (%p4309_p7), [#allocation4], 4294967040 }
 0xc78 PF: > { %s4379_s19 = sld [smem:[#allocation7_spill]]  ;;  %s4380_s29 = sld [smem:[#allocation6_spill]] }
 0xc79   : > { %s4381_s30 = sld [smem:[#allocation8_spill]] }
 0xc7e   : > { %s25_s15 = sadd.s32 1, %s4379_s19  }
 0xc7f   : > { %p22_p6 = scmp.ge.s32.totalorder %s25_s15, 4  }
 0xc81   :  { %24 = sbr.rel (!%p22_p6) target bundleno = 8 (0x8), region = 151 }
 0xc88   :  { %2847 = vsyncpa [#allocation4], 1 }
 0xc89   :  { %2849 = vsyncpa [#allocation4 + $0x1], 1 }

</bundles_post_ra>
